<compile_context>
chip_gen: v5e
topology: v5e:2x2
jax: 0.10.0
libtpu: 0.0.40
codegen_flags: <defaults>
</compile_context>

<pallas_src>
import jax
import jax.numpy as jnp
from jax.experimental import pallas as pl
from jax.experimental.pallas import tpu as pltpu

_SLOT_GROUP = 8  # slots per grid step == sublanes per dense output store


def _round_up(x, m):
    return (x + m - 1) // m * m


def _choose_row_block(n_rows, max_block=1024):
    """Lane block for the flattened-input axis: smallest multiple of 128 covering
    n_rows, capped at max_block.  v7x's second TensorCore is fed via the slot-group
    grid axis, so there is no need to force >=2 row blocks."""
    return max(128, min(max_block, _round_up(n_rows, 128)))


def _edit_sampler_kernel(xT_ref, wT_ref, biasT_ref, tok_ref):
    """Deterministic synthetic edit-sampler (stand-in for self._model.sample):
         logits[n, st, v] = (x @ W)[n, v] + bias[st, v]
         token[st, n]     = argmax_v logits[n, st, v]   (ties -> smallest v)
    Transposed orientation: vocab on sublanes, flattened inputs on lanes, so the
    argmax is a cheap sublane reduce and the result is already lane-dense.
    One grid step = one row block x one group of _SLOT_GROUP slots.
    """
    V = wT_ref.shape[0]
    n_blk = xT_ref.shape[1]
    sg = biasT_ref.shape[-1]

    # MXU: transposed projection (V, n_block), f32 accumulate.
    base = jnp.dot(wT_ref[...], xT_ref[...], preferred_element_type=jnp.float32)

    # Hoisted vocab-index iota on the sublane axis (shared by all slots in the group).
    iota_v = jax.lax.broadcasted_iota(jnp.int32, (V, n_blk), 0)

    bias_grp = biasT_ref[...]                          # (V, sg) — tiny
    rows = []
    for u in range(sg):                                # static unroll over the group
        col = bias_grp[:, u:u + 1]                     # (V, 1) static lane slice
        logits = base + col                            # lane-broadcast add (VPU)
        m = jnp.max(logits, axis=0, keepdims=True)     # sublane reduce
        tok = jnp.min(jnp.where(logits >= m, iota_v, V),
                      axis=0, keepdims=True)           # (1, n_blk), ties -> smallest v
        rows.append(tok)
    # One dense (sg, n_blk) store instead of sg masked single-sublane stores.
    tok_ref[...] = jnp.concatenate(rows, axis=0)


def _sample_tokens(all_inputs, W, bias, S, T, *, max_block=1024):
    """Runs the sampler kernel.  Returns tok (N, S, T) int32 and lens (N, S) int32."""
    N, D = all_inputs.shape
    V = W.shape[1]
    ST = S * T
    assert bias.shape == (ST, V)

    sg = _SLOT_GROUP
    ST_pad = _round_up(ST, sg)
    n_groups = ST_pad // sg

    n_block = _choose_row_block(N, max_block)
    N_pad = _round_up(N, n_block)

    # Transposed operands: flattened inputs on lanes, contraction / vocab on sublanes.
    xT = jnp.pad(all_inputs, ((0, N_pad - N), (0, 0))).T           # (D, N_pad)
    wT = W.T                                                        # (V, D)
    biasT = jnp.pad(bias, ((0, ST_pad - ST), (0, 0)))               # (ST_pad, V)
    biasT = biasT.reshape(n_groups, sg, V).transpose(0, 2, 1)       # (G, V, sg)

    tok_t = pl.pallas_call(
        _edit_sampler_kernel,
        out_shape=jax.ShapeDtypeStruct((ST_pad, N_pad), jnp.int32),
        grid_spec=pltpu.PrefetchScalarGridSpec(
            num_scalar_prefetch=0,
            grid=(N_pad // n_block, n_groups),
            in_specs=[
                pl.BlockSpec((D, n_block), lambda i, g: (0, i)),       # x^T row block
                pl.BlockSpec((V, D), lambda i, g: (0, 0)),             # W^T (whole)
                pl.BlockSpec((None, V, sg), lambda i, g: (g, 0, 0)),   # bias slot group
            ],
            out_specs=pl.BlockSpec((sg, n_block), lambda i, g: (g, i)),
        ),
        compiler_params=pltpu.CompilerParams(
            dimension_semantics=("parallel", "parallel"),
            # Explicit VMEM budget (per-block live set is a few MiB even at 1024 lanes):
            # portable down to v7x's 64 MiB VMEM.
            vmem_limit_bytes=32 * 1024 * 1024,
        ),
    )(xT, wT, biasT)

    # (ST_pad, N_pad) -> (N, S, T); padded slot rows / padded input cols sliced away.
    tok = jnp.transpose(tok_t[:ST, :N], (1, 0)).reshape(N, S, T)
    # Lengths in the wrapper (plain jnp), same rule as before.
    lens = (1 + tok[:, :, 0] % T).astype(jnp.int32)
    return tok, lens


class EditSamplingPriorFn:
    """JAX/Pallas port of the PyTorch EditSamplingPriorFn forward pass.

    The external `self._model.sample(...)` (RNN edit-proposal sampler + heuristic
    rejection) is replaced by a deterministic synthetic sampler whose compute lives
    in `_edit_sampler_kernel`.  forward() returns the Categorical support tuple
    (seq_supp_batch, length_supp_batch) as int32 arrays.
    """

    def __init__(self, input_size, vocab_size=128, samples_per_input=1, seq_length=15,
                 key=None):
        self._input_size = input_size
        self._vocab_size = vocab_size
        self._samples_per_input = samples_per_input
        self._seq_length = seq_length
        self._fixed_seq = None
        if key is None:
            key = jax.random.PRNGKey(0)
        k1, k2, k3 = jax.random.split(key, 3)
        # Deterministic synthetic "model" parameters.
        self._W = jax.random.normal(k1, (input_size, vocab_size), jnp.float32)
        self._step_emb = jax.random.normal(k2, (seq_length, vocab_size), jnp.float32)
        self._samp_emb = jax.random.normal(k3, (samples_per_input, vocab_size), jnp.float32)

    def set_samples_per_input(self, samples_per_input):
        self._samples_per_input = samples_per_input

    def set_fixed_seq(self, seq=None, length=None):
        # seq: (seq_length, B) int32, stored transposed -> (B, seq_length), as in PyTorch.
        if seq is None or length is None:
            self._fixed_seq = None
        else:
            self._fixed_seq = (jnp.transpose(seq, (1, 0)), length)

    def forward(self, observation):
        B, obs_dim = observation.shape
        ipo = obs_dim // self._input_size          # inputs_per_observation
        N = B * ipo
        S = self._samples_per_input
        T = self._seq_length

        all_inputs = observation.reshape(N, self._input_size)

        # TODO(synk): the real self._model.sample(...) (RNN edit proposer + heuristic
        # rejection over `n_before_heuristic` candidates) has no checkpoint here; it is
        # replaced by the deterministic sampler kernel driven only by `all_inputs`.
        # n-invariant bias table, hoisted out of the kernel's hot loop: row st = s*T + t.
        bias = (self._samp_emb[:, None, :] + self._step_emb[None, :, :]
                ).reshape(S * T, self._vocab_size)
        tok, lens = _sample_tokens(all_inputs, self._W, bias, S, T)

        # (N, S, T) -> (B, ipo*S, T): matches the torch fill order
        #   seq_supp_batch[i, 1 + j*S : 1 + (j+1)*S] = samples[i*ipo + j]
        tok_b = tok.reshape(B, ipo * S, T)
        len_b = lens.reshape(B, ipo * S)

        if self._fixed_seq is not None:
            fixed_tok, fixed_len = self._fixed_seq              # (B, T), (B,)
            fixed_tok = fixed_tok.astype(jnp.int32)[:, None, :]
            fixed_len = fixed_len.astype(jnp.int32)[:, None]
        else:
            # Matches torch: support row 0 stays zero when no fixed sequence is set.
            fixed_tok = jnp.zeros((B, 1, T), jnp.int32)
            fixed_len = jnp.zeros((B, 1), jnp.int32)

        seq_supp = jnp.concatenate([fixed_tok, tok_b], axis=1)      # (B, ipo*S+1, T)
        length_supp = jnp.concatenate([fixed_len, len_b], axis=1)   # (B, ipo*S+1)

        # Categorical(support=(seq, length)) is an external wrapper; return its support.
        return seq_supp, length_supp


if __name__ == "__main__":
    key = jax.random.PRNGKey(0)
    k_param, k_obs, k_seq, k_len = jax.random.split(key, 4)

    B = 2
    input_size = 32
    inputs_per_observation = 4
    samples_per_input = 2
    seq_length = 15
    vocab = 128

    prior = EditSamplingPriorFn(
        input_size,
        vocab_size=vocab,
        samples_per_input=samples_per_input,
        seq_length=seq_length,
        key=k_param,
    )

    observation = jax.random.normal(
        k_obs, (B, inputs_per_observation * input_size), jnp.float32)
    # Fixed utterance batch as produced by set_data_batch: (seq_length, B) tokens + lengths.
    fixed_seq = jax.random.randint(k_seq, (seq_length, B), 0, vocab, jnp.int32)
    fixed_len = jax.random.randint(k_len, (B,), 1, seq_length + 1, jnp.int32)
    prior.set_fixed_seq(seq=fixed_seq, length=fixed_len)

    seq_supp, length_supp = prior.forward(observation)
    jax.block_until_ready((seq_supp, length_supp))

    n_supp = samples_per_input * inputs_per_observation + 1
    assert seq_supp.shape == (B, n_supp, seq_length)
    assert length_supp.shape == (B, n_supp)
    assert seq_supp.dtype == jnp.int32 and length_supp.dtype == jnp.int32
    # Row 0 of the support must be the fixed sequence / length.
    assert bool(jnp.all(seq_supp[:, 0, :] == fixed_seq.T))
    assert bool(jnp.all(length_supp[:, 0] == fixed_len))
    # Sampled tokens / lengths stay in range.
    assert bool(jnp.all((seq_supp[:, 1:, :] >= 0) & (seq_supp[:, 1:, :] < vocab)))
    assert bool(jnp.all((length_supp[:, 1:] >= 1) & (length_supp[:, 1:] <= seq_length)))

    # Tolerance-robust check of the synthetic sampler against a pure-JAX recomputation:
    # every chosen token's logit must be within 1e-3 of that position's max logit.
    N = B * inputs_per_observation
    all_inputs = observation.reshape(N, input_size)
    logits_ref = ((all_inputs @ prior._W)[:, None, None, :]
                  + prior._samp_emb[None, :, None, :]
                  + prior._step_emb[None, None, :, :])
    tok_nst = seq_supp[:, 1:, :].reshape(N, samples_per_input, seq_length)
    chosen = jnp.take_along_axis(logits_ref, tok_nst[..., None], axis=-1)[..., 0]
    assert bool(jnp.all(chosen >= logits_ref.max(axis=-1) - 1e-3))

    print("KERNEL_OK")
</pallas_src>

<mosaic_0001>
module attributes {stable_mosaic.version = 11 : i64} {
  func.func @_edit_sampler_kernel(%arg0: i32, %arg1: i32, %arg2: memref<32x128xf32, #tpu.memory_space<vmem>>, %arg3: memref<128x32xf32, #tpu.memory_space<vmem>>, %arg4: memref<1x128x8xf32, #tpu.memory_space<vmem>>, %arg5: memref<8x128xi32, #tpu.memory_space<vmem>>) attributes {dimension_semantics = [#tpu.dimension_semantics<parallel>, #tpu.dimension_semantics<parallel>], iteration_bounds = array<i64: 1, 4>, scalar_prefetch = 0 : i64, scratch_operands = 0 : i64, tpu.core_type = #tpu.core_type<tc>, window_params = [{transform_indices = @transform_0, window_bounds = array<i64: 32, 128>}, {pipeline_mode = #tpu.pipeline_mode<synchronous>, transform_indices = @transform_1, window_bounds = array<i64: 128, 32>}, {transform_indices = @transform_2, window_bounds = array<i64: 1, 128, 8>}, {transform_indices = @transform_3, window_bounds = array<i64: 8, 128>}]} {
    %c0 = arith.constant 0 : index
    %c0_0 = arith.constant 0 : index
    %0 = vector.load %arg3[%c0, %c0_0] : memref<128x32xf32, #tpu.memory_space<vmem>>, vector<128x32xf32>
    %c0_1 = arith.constant 0 : index
    %c0_2 = arith.constant 0 : index
    %1 = vector.load %arg2[%c0_1, %c0_2] : memref<32x128xf32, #tpu.memory_space<vmem>>, vector<32x128xf32>
    %cst = arith.constant dense<0.000000e+00> : vector<128x128xf32>
    %2 = tpu.matmul %0, %1, %cst {dimension_numbers = #tpu.dot_dimension_numbers<[1], [0], [0], [1], [0, 0, 1, 1], [], []>} : vector<128x32xf32>, vector<32x128xf32>, vector<128x128xf32> -> vector<128x128xf32>
    %3 = tpu.iota {dimensions = array<i32: 0>} : vector<128x128xi32>
    %c0_3 = arith.constant 0 : index
    %c0_4 = arith.constant 0 : index
    %c0_5 = arith.constant 0 : index
    %4 = vector.load %arg4[%c0_3, %c0_4, %c0_5] : memref<1x128x8xf32, #tpu.memory_space<vmem>>, vector<1x128x8xf32>
    %5 = vector.shape_cast %4 : vector<1x128x8xf32> to vector<128x8xf32>
    %6 = vector.extract_strided_slice %5 {offsets = [0, 0], sizes = [128, 1], strides = [1, 1]} : vector<128x8xf32> to vector<128x1xf32>
    %7 = vector.broadcast %6 : vector<128x1xf32> to vector<128x128xf32>
    %8 = arith.addf %2, %7 : vector<128x128xf32>
    %cst_6 = arith.constant dense<0xFF800000> : vector<128xf32>
    %9 = vector.multi_reduction <maximumf>, %8, %cst_6 [0] : vector<128x128xf32> to vector<128xf32>
    %10 = vector.shape_cast %9 : vector<128xf32> to vector<1x128xf32>
    %11 = vector.broadcast %10 : vector<1x128xf32> to vector<128x128xf32>
    %12 = arith.cmpf oge, %8, %11 : vector<128x128xf32>
    %c128_i32 = arith.constant 128 : i32
    %13 = vector.broadcast %c128_i32 : i32 to vector<128x128xi32>
    %14 = arith.select %12, %3, %13 : vector<128x128xi1>, vector<128x128xi32>
    %cst_7 = arith.constant dense<2147483647> : vector<128xi32>
    %15 = vector.multi_reduction <minsi>, %14, %cst_7 [0] : vector<128x128xi32> to vector<128xi32>
    %16 = vector.shape_cast %15 : vector<128xi32> to vector<1x128xi32>
    %17 = vector.extract_strided_slice %5 {offsets = [0, 1], sizes = [128, 1], strides = [1, 1]} : vector<128x8xf32> to vector<128x1xf32>
    %18 = vector.broadcast %17 : vector<128x1xf32> to vector<128x128xf32>
    %19 = arith.addf %2, %18 : vector<128x128xf32>
    %cst_8 = arith.constant dense<0xFF800000> : vector<128xf32>
    %20 = vector.multi_reduction <maximumf>, %19, %cst_8 [0] : vector<128x128xf32> to vector<128xf32>
    %21 = vector.shape_cast %20 : vector<128xf32> to vector<1x128xf32>
    %22 = vector.broadcast %21 : vector<1x128xf32> to vector<128x128xf32>
    %23 = arith.cmpf oge, %19, %22 : vector<128x128xf32>
    %c128_i32_9 = arith.constant 128 : i32
    %24 = vector.broadcast %c128_i32_9 : i32 to vector<128x128xi32>
    %25 = arith.select %23, %3, %24 : vector<128x128xi1>, vector<128x128xi32>
    %cst_10 = arith.constant dense<2147483647> : vector<128xi32>
    %26 = vector.multi_reduction <minsi>, %25, %cst_10 [0] : vector<128x128xi32> to vector<128xi32>
    %27 = vector.shape_cast %26 : vector<128xi32> to vector<1x128xi32>
    %28 = vector.extract_strided_slice %5 {offsets = [0, 2], sizes = [128, 1], strides = [1, 1]} : vector<128x8xf32> to vector<128x1xf32>
    %29 = vector.broadcast %28 : vector<128x1xf32> to vector<128x128xf32>
    %30 = arith.addf %2, %29 : vector<128x128xf32>
    %cst_11 = arith.constant dense<0xFF800000> : vector<128xf32>
    %31 = vector.multi_reduction <maximumf>, %30, %cst_11 [0] : vector<128x128xf32> to vector<128xf32>
    %32 = vector.shape_cast %31 : vector<128xf32> to vector<1x128xf32>
    %33 = vector.broadcast %32 : vector<1x128xf32> to vector<128x128xf32>
    %34 = arith.cmpf oge, %30, %33 : vector<128x128xf32>
    %c128_i32_12 = arith.constant 128 : i32
    %35 = vector.broadcast %c128_i32_12 : i32 to vector<128x128xi32>
    %36 = arith.select %34, %3, %35 : vector<128x128xi1>, vector<128x128xi32>
    %cst_13 = arith.constant dense<2147483647> : vector<128xi32>
    %37 = vector.multi_reduction <minsi>, %36, %cst_13 [0] : vector<128x128xi32> to vector<128xi32>
    %38 = vector.shape_cast %37 : vector<128xi32> to vector<1x128xi32>
    %39 = vector.extract_strided_slice %5 {offsets = [0, 3], sizes = [128, 1], strides = [1, 1]} : vector<128x8xf32> to vector<128x1xf32>
    %40 = vector.broadcast %39 : vector<128x1xf32> to vector<128x128xf32>
    %41 = arith.addf %2, %40 : vector<128x128xf32>
    %cst_14 = arith.constant dense<0xFF800000> : vector<128xf32>
    %42 = vector.multi_reduction <maximumf>, %41, %cst_14 [0] : vector<128x128xf32> to vector<128xf32>
    %43 = vector.shape_cast %42 : vector<128xf32> to vector<1x128xf32>
    %44 = vector.broadcast %43 : vector<1x128xf32> to vector<128x128xf32>
    %45 = arith.cmpf oge, %41, %44 : vector<128x128xf32>
    %c128_i32_15 = arith.constant 128 : i32
    %46 = vector.broadcast %c128_i32_15 : i32 to vector<128x128xi32>
    %47 = arith.select %45, %3, %46 : vector<128x128xi1>, vector<128x128xi32>
    %cst_16 = arith.constant dense<2147483647> : vector<128xi32>
    %48 = vector.multi_reduction <minsi>, %47, %cst_16 [0] : vector<128x128xi32> to vector<128xi32>
    %49 = vector.shape_cast %48 : vector<128xi32> to vector<1x128xi32>
    %50 = vector.extract_strided_slice %5 {offsets = [0, 4], sizes = [128, 1], strides = [1, 1]} : vector<128x8xf32> to vector<128x1xf32>
    %51 = vector.broadcast %50 : vector<128x1xf32> to vector<128x128xf32>
    %52 = arith.addf %2, %51 : vector<128x128xf32>
    %cst_17 = arith.constant dense<0xFF800000> : vector<128xf32>
    %53 = vector.multi_reduction <maximumf>, %52, %cst_17 [0] : vector<128x128xf32> to vector<128xf32>
    %54 = vector.shape_cast %53 : vector<128xf32> to vector<1x128xf32>
    %55 = vector.broadcast %54 : vector<1x128xf32> to vector<128x128xf32>
    %56 = arith.cmpf oge, %52, %55 : vector<128x128xf32>
    %c128_i32_18 = arith.constant 128 : i32
    %57 = vector.broadcast %c128_i32_18 : i32 to vector<128x128xi32>
    %58 = arith.select %56, %3, %57 : vector<128x128xi1>, vector<128x128xi32>
    %cst_19 = arith.constant dense<2147483647> : vector<128xi32>
    %59 = vector.multi_reduction <minsi>, %58, %cst_19 [0] : vector<128x128xi32> to vector<128xi32>
    %60 = vector.shape_cast %59 : vector<128xi32> to vector<1x128xi32>
    %61 = vector.extract_strided_slice %5 {offsets = [0, 5], sizes = [128, 1], strides = [1, 1]} : vector<128x8xf32> to vector<128x1xf32>
    %62 = vector.broadcast %61 : vector<128x1xf32> to vector<128x128xf32>
    %63 = arith.addf %2, %62 : vector<128x128xf32>
    %cst_20 = arith.constant dense<0xFF800000> : vector<128xf32>
    %64 = vector.multi_reduction <maximumf>, %63, %cst_20 [0] : vector<128x128xf32> to vector<128xf32>
    %65 = vector.shape_cast %64 : vector<128xf32> to vector<1x128xf32>
    %66 = vector.broadcast %65 : vector<1x128xf32> to vector<128x128xf32>
    %67 = arith.cmpf oge, %63, %66 : vector<128x128xf32>
    %c128_i32_21 = arith.constant 128 : i32
    %68 = vector.broadcast %c128_i32_21 : i32 to vector<128x128xi32>
    %69 = arith.select %67, %3, %68 : vector<128x128xi1>, vector<128x128xi32>
    %cst_22 = arith.constant dense<2147483647> : vector<128xi32>
    %70 = vector.multi_reduction <minsi>, %69, %cst_22 [0] : vector<128x128xi32> to vector<128xi32>
    %71 = vector.shape_cast %70 : vector<128xi32> to vector<1x128xi32>
    %72 = vector.extract_strided_slice %5 {offsets = [0, 6], sizes = [128, 1], strides = [1, 1]} : vector<128x8xf32> to vector<128x1xf32>
    %73 = vector.broadcast %72 : vector<128x1xf32> to vector<128x128xf32>
    %74 = arith.addf %2, %73 : vector<128x128xf32>
    %cst_23 = arith.constant dense<0xFF800000> : vector<128xf32>
    %75 = vector.multi_reduction <maximumf>, %74, %cst_23 [0] : vector<128x128xf32> to vector<128xf32>
    %76 = vector.shape_cast %75 : vector<128xf32> to vector<1x128xf32>
    %77 = vector.broadcast %76 : vector<1x128xf32> to vector<128x128xf32>
    %78 = arith.cmpf oge, %74, %77 : vector<128x128xf32>
    %c128_i32_24 = arith.constant 128 : i32
    %79 = vector.broadcast %c128_i32_24 : i32 to vector<128x128xi32>
    %80 = arith.select %78, %3, %79 : vector<128x128xi1>, vector<128x128xi32>
    %cst_25 = arith.constant dense<2147483647> : vector<128xi32>
    %81 = vector.multi_reduction <minsi>, %80, %cst_25 [0] : vector<128x128xi32> to vector<128xi32>
    %82 = vector.shape_cast %81 : vector<128xi32> to vector<1x128xi32>
    %83 = vector.extract_strided_slice %5 {offsets = [0, 7], sizes = [128, 1], strides = [1, 1]} : vector<128x8xf32> to vector<128x1xf32>
    %84 = vector.broadcast %83 : vector<128x1xf32> to vector<128x128xf32>
    %85 = arith.addf %2, %84 : vector<128x128xf32>
    %cst_26 = arith.constant dense<0xFF800000> : vector<128xf32>
    %86 = vector.multi_reduction <maximumf>, %85, %cst_26 [0] : vector<128x128xf32> to vector<128xf32>
    %87 = vector.shape_cast %86 : vector<128xf32> to vector<1x128xf32>
    %88 = vector.broadcast %87 : vector<1x128xf32> to vector<128x128xf32>
    %89 = arith.cmpf oge, %85, %88 : vector<128x128xf32>
    %c128_i32_27 = arith.constant 128 : i32
    %90 = vector.broadcast %c128_i32_27 : i32 to vector<128x128xi32>
    %91 = arith.select %89, %3, %90 : vector<128x128xi1>, vector<128x128xi32>
    %cst_28 = arith.constant dense<2147483647> : vector<128xi32>
    %92 = vector.multi_reduction <minsi>, %91, %cst_28 [0] : vector<128x128xi32> to vector<128xi32>
    %93 = vector.shape_cast %92 : vector<128xi32> to vector<1x128xi32>
    %94 = tpu.concatenate %16, %27, %38, %49, %60, %71, %82, %93 in 0 : vector<1x128xi32>, vector<1x128xi32>, vector<1x128xi32>, vector<1x128xi32>, vector<1x128xi32>, vector<1x128xi32>, vector<1x128xi32>, vector<1x128xi32> -> vector<8x128xi32>
    %c0_29 = arith.constant 0 : index
    %c0_30 = arith.constant 0 : index
    %95 = vector.load %arg5[%c0_29, %c0_30] : memref<8x128xi32, #tpu.memory_space<vmem>>, vector<8x128xi32>
    tpu.vector_store %arg5[%c0_29, %c0_30], %94 {strides = array<i32>} : memref<8x128xi32, #tpu.memory_space<vmem>>, vector<8x128xi32>,
    return
  }
  func.func @transform_0(%arg0: i32, %arg1: i32) -> (i32, i32) {
    %c0_i32 = arith.constant 0 : i32
    %c0_i32_0 = arith.constant 0 : i32
    return %c0_i32, %arg0 : i32, i32
  }
  func.func @transform_1(%arg0: i32, %arg1: i32) -> (i32, i32) {
    %c0_i32 = arith.constant 0 : i32
    %c0_i32_0 = arith.constant 0 : i32
    %c0_i32_1 = arith.constant 0 : i32
    return %c0_i32, %c0_i32_0 : i32, i32
  }
  func.func @transform_2(%arg0: i32, %arg1: i32) -> (i32, i32, i32) {
    %c0_i32 = arith.constant 0 : i32
    %c0_i32_0 = arith.constant 0 : i32
    %c0_i32_1 = arith.constant 0 : i32
    return %arg1, %c0_i32, %c0_i32_0 : i32, i32, i32
  }
  func.func @transform_3(%arg0: i32, %arg1: i32) -> (i32, i32) {
    %c0_i32 = arith.constant 0 : i32
    return %arg1, %arg0 : i32, i32
  }
}

</mosaic_0001>

<bundles_post_ra>
// kernel: tpu_custom_call.1
= control target key start
LH: loop header
LB: loop body
LE: loop exit
PB: predicated region body
PF: predicated region fallthrough
CT: control target
= control target key end

     0   :  { %8 = vsyncpa [#allocation3], 0  ;;  %s3728_s0 = inlined_call_operand.vmem [shape: f32[32,128], index: 0, kind: input, shape index: {}]   ;;  %s3729_s1 = inlined_call_operand.vmem [shape: f32[128,32], index: 1, kind: input, shape index: {}]   ;;  %s3730_s2 = inlined_call_operand.vmem [shape: f32[4,128,8], index: 2, kind: input, shape index: {}]   ;;  %s3731_s3 = inlined_call_operand.hbm [shape: s32[32,128], index: 3, kind: output, shape index: {}]  }
   0x1   :  { %10 = vsyncpa [#allocation3 + $0x1], 0  ;;  %s2127_s12 = smov 0   ;;  %s2129_s13 = smov 0  }
   0x2   :  { %s2131_s14 = smov 0   ;;  %s2133_s15 = smov 0  }
   0x3   :  { %s2135_s16 = smov 0   ;;  %s2137_s17 = smov 0  }
   0x4 LB: > { %s1874_s18 = sadd.s32 4294967295, %s2097_s17   ;;  %s1875_s19 = sadd.s32 4294967294, %s2097_s17   ;;  %s2097_s17 = sphi %s2137_s17, %s16_s17   ;;  %s2093_s16 = sphi %s2135_s16, %s3984_s16   ;;  %s2089_s15 = sphi %s2133_s15, %s3983_s15   ;;  %s2085_s14 = sphi %s2131_s14, %s3982_s14   ;;  %s2081_s13 = sphi %s2129_s13, %s3981_s13   ;;  %s2077_s12 = sphi %s2127_s12, %s3980_s12  }
   0x5   : > { %s25_s20 = sadd.s32 1, %s2093_s16  ;;  %s110_s21 = sadd.s32 1, %s2085_s14 }
   0x6   : > { %p26_p0 = scmp.ge.s32.totalorder %s25_s20, 4  ;;  %p120_p1 = scmp.ne.s32.totalorder %s2085_s14, %s2081_s13 }
   0x7   : > { %p121_p2 = scmp.eq.s32.totalorder %s1874_s18, 3  ;;  %p126_p3 = scmp.ne.s32.totalorder %s2081_s13, %s2077_s12 }
   0x8   : > { %s3986_s20 = smov (%p26_p0, %s25_s20), 0  ;;  %p127_p5 = scmp.eq.s32.totalorder %s1875_s19, 3 }
   0x9   : > { %p2167_p4 = por %p121_p2, %p120_p1  ;;  %s105_s23 = ssub.s32 %s2093_s16, %s3986_s20 }
   0xa   : > { %p1879_p6 = scmp.ge.s32.totalorder %s2097_s17, 1  ;;  %p108_p7 = scmp.eq.s32.totalorder %s105_s23, 0 }
   0xb   : > { %p2174_p8 = por %p127_p5, %p126_p3  ;;  %p163_p9 = scmp.lt.s32.totalorder %s2097_s17, 5 }
   0xc   : > { %s2180_s25 = scalar_select %p108_p7, %s2085_s14, %s110_s21  }
   0xd   : > { %p164_p10 = pnand %p1879_p6, %p163_p9 }
   0xf   : > { %167 = sbr.rel (%p164_p10) target bundleno = 564 (0x234), region = 32 }
  0x14   : > { %v219_v0 = vld [vmem:[%s3728_s0 + $0x18] sm:$0xff]  ;;  %v218_v1 = vld [vmem:[%s3728_s0 + $0x10] sm:$0xff]  ;;  %p195_p11 = scmp.lt.s32.totalorder %s2089_s15, 3  ;;  %v217_v2 = vld [vmem:[%s3728_s0 + $0x8] sm:$0xff]  ;;  %v2099_v4 = vmov 0   ;;  %vm220_vm0 = vcmask 261120  }
  0x15   : > { %281 = vmatpush.msra.mxu0 %v219_v0  ;;  %1904 = vmatpush.msra.mxu1 %v219_v0  ;;  %v216_v3 = vld [vmem:[%s3728_s0] sm:$0xff]  ;;  %v201_v15 = vld [vmem:[%s3729_s1 + $0x8] sm:$0xff]  ;;  %v202_v22 = vld [vmem:[%s3729_s1 + $0x10] sm:$0xff]  ;;  %v2100_v37 = vmov 1   ;;  %v2101_v38 = vmov 2   ;;  %v2102_v48 = vmov 3  }
  0x16   : > { %1905 = vmatpush.msra.mxu2 %v219_v0  ;;  %1906 = vmatpush.msra.mxu3 %v219_v0  ;;  %s196_s5 = scalar_select %p195_p11, %s2089_s15, 3  ;;  %v200_v8 = vld [vmem:[%s3729_s1] sm:$0xff]  ;;  %v205_v16 = vld [vmem:[%s3729_s1 + $0x28] sm:$0xff]  ;;  %v206_v23 = vld [vmem:[%s3729_s1 + $0x30] sm:$0xff] }
  0x17   : > { %282 = vmatpush.msra.mxu0 %v218_v1  ;;  %1907 = vmatpush.msra.mxu1 %v218_v1  ;;  %v204_v9 = vld [vmem:[%s3729_s1 + $0x20] sm:$0xff]  ;;  %v209_v17 = vld [vmem:[%s3729_s1 + $0x48] sm:$0xff]  ;;  %v210_v24 = vld [vmem:[%s3729_s1 + $0x50] sm:$0xff]  ;;  %s1900_s19 = sshll.u32 %s2089_s15, 3  ;;  %s2039_s7 = scalar_lea.hbm %s3731_s3, 32 }
  0x18   : > { %1908 = vmatpush.msra.mxu2 %v218_v1  ;;  %1909 = vmatpush.msra.mxu3 %v218_v1  ;;  %s1903_s6 = sshll.u32 %s196_s5, 7  ;;  %v208_v10 = vld [vmem:[%s3729_s1 + $0x40] sm:$0xff]  ;;  %v213_v18 = vld [vmem:[%s3729_s1 + $0x68] sm:$0xff]  ;;  %v214_v25 = vld [vmem:[%s3729_s1 + $0x70] sm:$0xff]  ;;  %s1786_s26 = scalar_lea.hbm %s3731_s3, %s1900_s19 }
  0x19   : > { %283 = vmatpush.msra.mxu0 %v217_v2  ;;  %1910 = vmatpush.msra.mxu1 %v217_v2  ;;  %s2199_s11 = scalar_lea.vmem %s3730_s2, %s1903_s6  ;;  %v212_v11 = vld [vmem:[%s3729_s1 + $0x60] sm:$0xff]  ;;  %v203_v29 = vld [vmem:[%s3729_s1 + $0x18] sm:$0xff]  ;;  %s1790_s29 = sshll.u32 %s1786_s26, 4  ;;  %s1791_s29 = int_to_ptr.hbm [resolvable:$true] %s1790_s29 }
  0x1a   : > { %1911 = vmatpush.msra.mxu2 %v217_v2  ;;  %1912 = vmatpush.msra.mxu3 %v217_v2  ;;  %v2202_v5 = vld [vmem:[%s2199_s11 + $0x20] sm:$0xff]  ;;  %v2205_v6 = vld [vmem:[%s2199_s11 + $0x10] sm:$0xff]  ;;  %v2230_v12 = vld [vmem:[%s2199_s11 + $0x28] sm:$0xff]  ;;  %s2033_s30 = sshra.s32 %s1791_s29, 4  ;;  %s2034_s30 = int_to_ptr.hbm [resolvable:$true] %s2033_s30 }
  0x1b   : > { %1981 = vset.pattern.permute.xlu2 %v2099_v4  ;;  %1980 = vset.pattern.permute.xlu1 %v2099_v4  ;;  %3838 = vst [vmem:[#allocation5_spill] sm:$0xff] %v2205_v6  ;;  %v2208_v7 = vld [vmem:[%s2199_s11] sm:$0xff]  ;;  %v2233_v13 = vld [vmem:[%s2199_s11 + $0x18] sm:$0xff]  ;;  %v2236_v14 = vld [vmem:[%s2199_s11 + $0x8] sm:$0xff]  ;;  %s2035_s4 = scalar_lea.hbm %s2034_s30, 8  ;;  %p2040_p1 = scmp.lt.s32.totalorder %s2034_s30, %s3731_s3 }
  0x1c   : > { %1979 = vset.pattern.permute.xlu0 %v2099_v4  ;;  %284 = vmatpush.msra.mxu0 %v216_v3  ;;  %3839 = vst [vmem:[#allocation6_spill] sm:$0xff] %v2236_v14  ;;  %v2258_v19 = vld [vmem:[%s2199_s11 + $0x40] sm:$0xff]  ;;  %v2261_v20 = vld [vmem:[%s2199_s11 + $0x38] sm:$0xff]  ;;  %v2264_v21 = vld [vmem:[%s2199_s11 + $0x30] sm:$0xff]  ;;  %p2036_p12 = scmp.ne.s32.totalorder %s2034_s30, %s2035_s4  ;;  %p2041_p2 = scmp.lt.s32.totalorder %s2039_s7, %s2035_s4 }
  0x1d   : > { %1913 = vmatpush.msra.mxu1 %v216_v3  ;;  %1914 = vmatpush.msra.mxu2 %v216_v3  ;;  %3840 = vst [vmem:[#allocation7_spill] sm:$0xff] %v2258_v19  ;;  %v2286_v26 = vld [vmem:[%s2199_s11 + $0x58] sm:$0xff]  ;;  %v2289_v27 = vld [vmem:[%s2199_s11 + $0x50] sm:$0xff]  ;;  %v2292_v28 = vld [vmem:[%s2199_s11 + $0x48] sm:$0xff] }
  0x1e   : > { %1915 = vmatpush.msra.mxu3 %v216_v3  ;;  %389 = vperm.xlu2 %1981, %v2202_v5   ;;  %3841 = vst [vmem:[#allocation8_spill] sm:$0xff] %v2261_v20  ;;  %v207_v30 = vld [vmem:[%s3729_s1 + $0x38] sm:$0xff]  ;;  %v2314_v33 = vld [vmem:[%s2199_s11 + $0x70] sm:$0xff]  ;;  %v2317_v34 = vld [vmem:[%s2199_s11 + $0x68] sm:$0xff]  ;;  %p2037_p13 = pnand %p2036_p12, %p2167_p4  ;;  %p2042_p3 = por %p2041_p2, %p2040_p1 }
  0x1f   : > { %379 = vperm.xlu1 %1980, %v2205_v6   ;;  %369 = vperm.xlu0 %1979, %v2208_v7   ;;  %3842 = vst [vmem:[#allocation9_spill] sm:$0xff] %v2286_v26  ;;  %v211_v31 = vld [vmem:[%s3729_s1 + $0x58] sm:$0xff]  ;;  %v2320_v35 = vld [vmem:[%s2199_s11 + $0x60] sm:$0xff] }
  0x20   : > { %1883 = vmatmul.msk.f32.vlgmr.msra.gmra.mxu0 %vm220_vm0, %v200_v8  ;;  %1887 = vmatmul.msk.f32.vlgmr.msra.gmra.mxu1 %vm220_vm0, %v204_v9  ;;  %3843 = vst [vmem:[#allocation10_spill] sm:$0xff] %v2289_v27  ;;  %v215_v32 = vld [vmem:[%s3729_s1 + $0x78] sm:$0xff]  ;;  %p2038_p0 = pneg %p2037_p13 }
  0x21   : > { %1891 = vmatmul.msk.f32.vlgmr.msra.gmra.mxu2 %vm220_vm0, %v208_v10  ;;  %1895 = vmatmul.msk.f32.vlgmr.msra.gmra.mxu3 %vm220_vm0, %v212_v11  ;;  %3844 = vst [vmem:[#allocation11_spill] sm:$0xff] %v2292_v28  ;;  %v2326_v36 = vld [vmem:[%s2199_s11 + $0x78] sm:$0xff] }
  0x22   : > { %3845 = vst [vmem:[#allocation12_spill] sm:$0xff] %v2314_v33  ;;  %p2043_p5 = pnand %p2042_p3, %p2038_p0 }
  0x23   : > { %3846 = vst [vmem:[#allocation13_spill] sm:$0xff] %v2320_v35 }
  0x24   : > { %3847 = vst [vmem:[#allocation14_spill] sm:$0xff] %v2326_v36 }
  0x26   : > { %394 = vperm.xlu2 %1981, %v2230_v12  }
  0x27   : > { %384 = vperm.xlu1 %1980, %v2233_v13   ;;  %374 = vperm.xlu0 %1979, %v2236_v14  }
  0x28   : > { %1884 = vmatmul.msk.f32.gmra.mxu0 %vm220_vm0, %v201_v15  ;;  %1888 = vmatmul.msk.f32.gmra.mxu1 %vm220_vm0, %v205_v16 }
  0x29   : > { %1892 = vmatmul.msk.f32.gmra.mxu2 %vm220_vm0, %v209_v17  ;;  %1896 = vmatmul.msk.f32.gmra.mxu3 %vm220_vm0, %v213_v18 }
  0x2e   : > { %409 = vperm.xlu2 %1981, %v2258_v19  }
  0x2f   : > { %404 = vperm.xlu1 %1980, %v2261_v20   ;;  %399 = vperm.xlu0 %1979, %v2264_v21  }
  0x30   : > { %1885 = vmatmul.msk.f32.gmra.mxu0 %vm220_vm0, %v202_v22  ;;  %1889 = vmatmul.msk.f32.gmra.mxu1 %vm220_vm0, %v206_v23 }
  0x31   : > { %1893 = vmatmul.msk.f32.gmra.mxu2 %vm220_vm0, %v210_v24  ;;  %1897 = vmatmul.msk.f32.gmra.mxu3 %vm220_vm0, %v214_v25 }
  0x36   : > { %424 = vperm.xlu2 %1981, %v2286_v26  }
  0x37   : > { %419 = vperm.xlu1 %1980, %v2289_v27   ;;  %414 = vperm.xlu0 %1979, %v2292_v28  }
  0x38   : > { %1886 = vmatmul.msk.f32.gmra.mxu0 %vm220_vm0, %v203_v29  ;;  %1890 = vmatmul.msk.f32.gmra.mxu1 %vm220_vm0, %v207_v30 }
  0x39   : > { %1894 = vmatmul.msk.f32.gmra.mxu2 %vm220_vm0, %v211_v31  ;;  %1898 = vmatmul.msk.f32.gmra.mxu3 %vm220_vm0, %v215_v32 }
  0x3e   : > { %439 = vperm.xlu2 %1981, %v2314_v33  }
  0x3f   : > { %434 = vperm.xlu1 %1980, %v2317_v34   ;;  %429 = vperm.xlu0 %1979, %v2320_v35  }
  0x46   : > { %1983 = vset.pattern.permute.xlu2 %v2100_v37 }
  0x47   : > { %1982 = vset.pattern.permute.xlu1 %v2100_v37  ;;  %444 = vperm.xlu0 %1979, %v2326_v36  }
  0x48   : > { %560 = vperm.xlu2 %1983, %v2236_v14   ;;  %556 = vperm.xlu1 %1982, %v2208_v7  }
  0x4f   : > { %1984 = vset.pattern.permute.xlu0 %v2100_v37 }
  0x50   : > { %572 = vperm.xlu2 %1983, %v2202_v5   ;;  %568 = vperm.xlu1 %1982, %v2233_v13  }
  0x51   : > { %564 = vperm.xlu0 %1984, %v2205_v6  }
  0x58   : > { %580 = vperm.xlu2 %1983, %v2264_v21   ;;  %576 = vperm.xlu1 %1982, %v2230_v12  }
  0x59   : > { %584 = vperm.xlu0 %1984, %v2261_v20  }
  0x60   : > { %592 = vperm.xlu2 %1983, %v2292_v28   ;;  %588 = vperm.xlu1 %1982, %v2258_v19  }
  0x61   : > { %596 = vperm.xlu0 %1984, %v2289_v27  }
  0x68   : > { %604 = vperm.xlu2 %1983, %v2320_v35   ;;  %600 = vperm.xlu1 %1982, %v2286_v26  }
  0x69   : > { %608 = vperm.xlu0 %1984, %v2317_v34  }
  0x70   : > { %616 = vperm.xlu2 %1983, %v2326_v36   ;;  %612 = vperm.xlu1 %1982, %v2314_v33  }
  0x71   : > { %1985 = vset.pattern.permute.xlu0 %v2101_v38 }
  0x72   : > { %728 = vperm.xlu0 %1985, %v2208_v7  }
  0x78   : > { %1987 = vset.pattern.permute.xlu2 %v2101_v38  ;;  %1986 = vset.pattern.permute.xlu1 %v2101_v38  ;;  %v390_v39 = vpop.permute.xlu2 %389 }
  0x79   : > { %736 = vperm.xlu2 %1987, %v2205_v6   ;;  %732 = vperm.xlu1 %1986, %v2236_v14  }
  0x7a   : > { %748 = vperm.xlu0 %1985, %v2230_v12  }
  0x80   : > { %v395_v40 = vpop.permute.xlu2 %394 }
  0x81   : > { %744 = vperm.xlu2 %1987, %v2202_v5   ;;  %740 = vperm.xlu1 %1986, %v2233_v13  }
  0x82   : > { %760 = vperm.xlu0 %1985, %v2258_v19  }
  0x88   : > { %v410_v41 = vpop.permute.xlu2 %409 }
  0x89   : > { %756 = vperm.xlu2 %1987, %v2261_v20   ;;  %752 = vperm.xlu1 %1986, %v2264_v21  }
  0x8a   : > { %772 = vperm.xlu0 %1985, %v2286_v26  }
  0x90   : > { %v2355_v42 = vpop.permute.xlu2 %424 }
  0x91   : > { %v380_v43 = vpop.permute.xlu1 %379  ;;  %768 = vperm.xlu2 %1987, %v2289_v27   ;;  %764 = vperm.xlu1 %1986, %v2292_v28   ;;  %v370_v44 = vpop.permute.xlu0 %369 }
  0x92   : > { %784 = vperm.xlu0 %1985, %v2314_v33  }
  0x98   : > { %v2360_v45 = vpop.permute.xlu2 %439 }
  0x99   : > { %v385_v46 = vpop.permute.xlu1 %384  ;;  %780 = vperm.xlu2 %1987, %v2317_v34   ;;  %776 = vperm.xlu1 %1986, %v2320_v35   ;;  %v375_v47 = vpop.permute.xlu0 %374 }
  0x9a   : > { %1989 = vset.pattern.permute.xlu0 %v2102_v48 }
  0x9b   : > { %904 = vperm.xlu0 %1989, %v2236_v14  }
  0x9d   : > { %v2365_v49 = vpop.f32.mrf.mxu0  ;;  %v2367_v50 = vpop.f32.mrf.mxu1 }
  0x9e   : > { %3848 = vst [vmem:[#allocation15_spill] sm:$0xff] %v2365_v49  ;;  %v2370_v51 = vadd.f32 %v370_v44, %v2365_v49  ;;  %v2373_v52 = vadd.f32 %v390_v39, %v2367_v50 }
  0x9f   : > { %3849 = vst [vmem:[#allocation16_spill] sm:$0xff] %v2367_v50 }
  0xa0   : > { %v463_v53 = vmax.f32 %v2370_v51, %v2373_v52 }
  0xa1   : > { %v405_v54 = vpop.permute.xlu1 %404  ;;  %1988 = vset.pattern.permute.xlu2 %v2102_v48  ;;  %788 = vperm.xlu1 %1986, %v2326_v36   ;;  %v400_v55 = vpop.permute.xlu0 %399 }
  0xa2   : > { %v2378_v56 = vpop.permute.xlu2 %560  ;;  %900 = vperm.xlu2 %1988, %v2208_v7  }
  0xa3   : > { %924 = vperm.xlu0 %1989, %v2264_v21  }
  0xa4   : > { %v2382_v57 = vpop.f32.mrf.mxu2  ;;  %v2384_v58 = vpop.f32.mrf.mxu3 }
  0xa5   : > { %3850 = vst [vmem:[#allocation17_spill] sm:$0xff] %v2382_v57  ;;  %v2386_v59 = vpop.f32.mrf.mxu0  ;;  %v2388_v60 = vpop.f32.mrf.mxu1  ;;  %v2391_v61 = vadd.f32 %v410_v41, %v2382_v57 }
  0xa6   : > { %3851 = vst [vmem:[#allocation18_spill] sm:$0xff] %v2384_v58  ;;  %v2394_v62 = vadd.f32 %v395_v40, %v2388_v60  ;;  %v2397_v63 = vadd.f32 %v375_v47, %v2386_v59 }
  0xa7   : > { %3852 = vst [vmem:[#allocation19_spill] sm:$0xff] %v2386_v59  ;;  %v467_v0 = vmax.f32 %v463_v53, %v2391_v61 }
  0xa8   : > { %3853 = vst [vmem:[#allocation20_spill] sm:$0xff] %v2388_v60  ;;  %v464_v1 = vmax.f32 %v2397_v63, %v2394_v62 }
  0xa9   : > { %v420_v2 = vpop.permute.xlu1 %419  ;;  %1990 = vset.pattern.permute.xlu1 %v2102_v48  ;;  %v415_v3 = vpop.permute.xlu0 %414 }
  0xaa   : > { %v573_v4 = vpop.permute.xlu2 %572  ;;  %912 = vperm.xlu2 %1988, %v2233_v13   ;;  %908 = vperm.xlu1 %1990, %v2205_v6  }
  0xab   : > { %936 = vperm.xlu0 %1989, %v2292_v28  }
  0xac   : > { %v2405_v8 = vpop.f32.mrf.mxu2  ;;  %v2407_v9 = vpop.f32.mrf.mxu3 }
  0xad   : > { %3854 = vst [vmem:[#allocation21_spill] sm:$0xff] %v2405_v8  ;;  %v2409_v10 = vpop.f32.mrf.mxu0  ;;  %v2411_v11 = vpop.f32.mrf.mxu1  ;;  %v2414_v15 = vadd.f32 %v415_v3, %v2405_v8 }
  0xae   : > { %3855 = vst [vmem:[#allocation22_spill] sm:$0xff] %v2409_v10  ;;  %v2417_v16 = vadd.f32 %v380_v43, %v2409_v10  ;;  %v2420_v17 = vadd.f32 %v400_v55, %v2411_v11 }
  0xaf   : > { %3856 = vst [vmem:[#allocation23_spill] sm:$0xff] %v2411_v11  ;;  %v468_v18 = vmax.f32 %v464_v1, %v2414_v15 }
  0xb0   : > { %v465_v22 = vmax.f32 %v2417_v16, %v2420_v17 }
  0xb1   : > { %v435_v23 = vpop.permute.xlu1 %434  ;;  %v430_v24 = vpop.permute.xlu0 %429 }
  0xb2   : > { %v2426_v25 = vadd.f32 %v435_v23, %v2407_v9  ;;  %v2429_v29 = vadd.f32 %v430_v24, %v2384_v58  ;;  %v581_v30 = vpop.permute.xlu2 %580  ;;  %920 = vperm.xlu2 %1988, %v2230_v12   ;;  %916 = vperm.xlu1 %1990, %v2202_v5  }
  0xb3   : > { %948 = vperm.xlu0 %1989, %v2320_v35  }
  0xb4   : > { %v472_v31 = vmax.f32 %v468_v18, %v2426_v25  ;;  %v471_v32 = vmax.f32 %v467_v0, %v2429_v29  ;;  %v2436_v37 = vpop.f32.mrf.mxu2  ;;  %v2438_v38 = vpop.f32.mrf.mxu3  ;;  %v2461_v0 = vadd.f32 %v573_v4, %v2367_v50  ;;  %v2103_v4 = vmov 4  }
  0xb5   : > { %3857 = vst [vmem:[#allocation24_spill] sm:$0xff] %v2436_v37  ;;  %v2441_v39 = vadd.f32 %v420_v2, %v2436_v37  ;;  %v2443_v40 = vpop.f32.mrf.mxu0  ;;  %v2445_v41 = vpop.f32.mrf.mxu1  ;;  %v2456_v53 = vadd.f32 %v2360_v45, %v2438_v38 }
  0xb6   : > { %3858 = vst [vmem:[#allocation25_spill] sm:$0xff] %v2443_v40  ;;  %v475_v43 = vmax.f32 %v471_v32, %v472_v31  ;;  %v2448_v44 = vadd.f32 %v385_v46, %v2443_v40  ;;  %v2451_v47 = vadd.f32 %v405_v54, %v2445_v41 }
  0xb7   : > { %3859 = vst [vmem:[#allocation26_spill] sm:$0xff] %v2445_v41  ;;  %v469_v48 = vmax.f32 %v465_v22, %v2441_v39 }
  0xb8   : > { %v466_v55 = vmax.f32 %v2448_v44, %v2451_v47 }
  0xb9   : > { %v445_v1 = vpop.permute.xlu0 %444  ;;  %v473_v2 = vmax.f32 %v469_v48, %v2456_v53 }
  0xba   : > { %v593_v46 = vpop.permute.xlu2 %592  ;;  %932 = vperm.xlu2 %1988, %v2258_v19   ;;  %928 = vperm.xlu1 %1990, %v2261_v20   ;;  %v557_v54 = vpop.permute.xlu1 %556 }
  0xbb   : > { %v2467_v3 = vadd.f32 %v557_v54, %v2365_v49  ;;  %960 = vperm.xlu0 %1989, %v2326_v36  }
  0xbc   : > { %v2470_v45 = vpop.f32.mrf.mxu2  ;;  %v2472_v18 = vpop.f32.mrf.mxu3 }
  0xbd   : > { %3860 = vst [vmem:[#allocation27_spill] sm:$0xff] %v2470_v45  ;;  %v2478_v22 = vadd.f32 %v2355_v42, %v2470_v45  ;;  %v2481_v23 = vadd.f32 %v445_v1, %v2472_v18  ;;  %v2488_v42 = vadd.f32 %v581_v30, %v2411_v11 }
  0xbf   : > { %v470_v24 = vmax.f32 %v466_v55, %v2478_v22 }
  0xc1   : > { %v474_v31 = vmax.f32 %v470_v24, %v2481_v23  ;;  %v334_v24 = vlaneseq }
  0xc2   : > { %v605_v32 = vpop.permute.xlu2 %604  ;;  %944 = vperm.xlu2 %1988, %v2286_v26   ;;  %940 = vperm.xlu1 %1990, %v2289_v27   ;;  %v569_v48 = vpop.permute.xlu1 %568 }
  0xc3   : > { %v476_v54 = vmax.f32 %v473_v2, %v474_v31  ;;  %v565_v36 = vpop.permute.xlu0 %564  ;;  %1993 = vset.pattern.permute.xlu0 %v2103_v4  ;;  %v2496_v28 = vshrl.u32 %v334_v24, 7  ;;  %v2504_v31 = vadd.f32 %v2378_v56, %v2386_v59  ;;  %v2517_v24 = vadd.f32 %v593_v46, %v2405_v8 }
  0xc4   : > { %v2491_v1 = vadd.f32 %v565_v36, %v2409_v10  ;;  %1080 = vperm.xlu0 %1993, %v2205_v6  }
  0xc5   : > { %v477_v55 = vmax.f32 %v475_v43, %v476_v54  ;;  %3861 = vst [vmem:[#allocation28_spill] sm:$0xff] %v2504_v31  ;;  %v2522_v11 = vadd.s32 8, %v2496_v28  ;;  %v2542_v8 = vadd.s32 48, %v2496_v28  ;;  %v2545_v6 = vadd.s32 56, %v2496_v28 }
  0xc6   : > { %3863 = vst [vmem:[#allocation30_spill] sm:$0xff] %v2517_v24  ;;  %v2563_v10 = vadd.s32 104, %v2496_v28 }
  0xc7   : > { %v478_v35 = vrot.slane %v477_v55, 4  ;;  %3867 = vst [vmem:[#allocation34_spill] sm:$0xff] %v2542_v8 }
  0xc8   : > { %3868 = vst [vmem:[#allocation35_spill] sm:$0xff] %v2545_v6 }
  0xc9   : > { %v479_v19 = vmax.f32 %v477_v55, %v478_v35  ;;  %v2510_v35 = vadd.f32 %v569_v48, %v2443_v40  ;;  %v2528_v48 = vadd.s32 24, %v2496_v28  ;;  %3874 = vst [vmem:[#allocation41_spill] sm:$0xff] %v2563_v10  ;;  %v2566_v40 = vadd.s32 112, %v2496_v28 }
  0xca   : > { %v2498_v2 = vpop.permute.xlu2 %616  ;;  %956 = vperm.xlu2 %1988, %v2314_v33   ;;  %952 = vperm.xlu1 %1990, %v2317_v34   ;;  %v577_v30 = vpop.permute.xlu1 %576  ;;  %v2548_v33 = vadd.s32 64, %v2496_v28 }
  0xcb   : > { %v480_v36 = vrot.slane %v479_v19, 2  ;;  %v2507_v43 = vadd.f32 %v577_v30, %v2388_v60  ;;  %v585_v54 = vpop.permute.xlu0 %584  ;;  %v2525_v30 = vadd.s32 16, %v2496_v28  ;;  %3864 = vst [vmem:[#allocation31_spill] sm:$0xff] %v2528_v48  ;;  %v2572_v60 = vadd.f32 %v605_v32, %v2384_v58 }
  0xcc   : > { %v2513_v55 = vadd.f32 %v585_v54, %v2445_v41  ;;  %1100 = vperm.xlu0 %1993, %v2261_v20   ;;  %v2533_v20 = vadd.s32 32, %v2496_v28  ;;  %3869 = vst [vmem:[#allocation36_spill] sm:$0xff] %v2548_v33  ;;  %v2551_v54 = vadd.s32 72, %v2496_v28  ;;  %v2569_v41 = vadd.s32 120, %v2496_v28 }
  0xcd   : > { %3862 = vst [vmem:[#allocation29_spill] sm:$0xff] %v2507_v43  ;;  %v481_v26 = vmax.f32 %v479_v19, %v480_v36  ;;  %v636_v56 = vmax.f32 %v2504_v31, %v2507_v43  ;;  %v2536_v19 = vadd.s32 40, %v2496_v28  ;;  %v2554_v43 = vadd.s32 80, %v2496_v28 }
  0xce   : > { %3865 = vst [vmem:[#allocation32_spill] sm:$0xff] %v2533_v20  ;;  %v2557_v31 = vadd.s32 88, %v2496_v28 }
  0xcf   : > { %3866 = vst [vmem:[#allocation33_spill] sm:$0xff] %v2536_v19  ;;  %v482_v46 = vrot.slane %v481_v26, 1  ;;  %v2539_v36 = vmax.f32 %v636_v56, %v2517_v24  ;;  %v2560_v56 = vadd.s32 96, %v2496_v28 }
  0xd0   : > { %3870 = vst [vmem:[#allocation37_spill] sm:$0xff] %v2551_v54 }
  0xd1   : > { %3871 = vst [vmem:[#allocation38_spill] sm:$0xff] %v2554_v43  ;;  %v483_v24 = vmax.f32 %v481_v26, %v482_v46 }
  0xd2   : > { %3872 = vst [vmem:[#allocation39_spill] sm:$0xff] %v2557_v31  ;;  %1992 = vset.pattern.permute.xlu2 %v2103_v4  ;;  %1991 = vset.pattern.permute.xlu1 %v2103_v4  ;;  %v2574_v59 = vpop.permute.xlu1 %588 }
  0xd3   : > { %3873 = vst [vmem:[#allocation40_spill] sm:$0xff] %v2560_v56  ;;  %vm484_vm1 = vcmp.ge.f32.partialorder %v2370_v51, %v483_v24  ;;  %vm485_vm2 = vcmp.ge.f32.partialorder %v2397_v63, %v483_v24  ;;  %vm486_vm3 = vcmp.ge.f32.partialorder %v2417_v16, %v483_v24  ;;  %vm487_vm4 = vcmp.ge.f32.partialorder %v2448_v44, %v483_v24  ;;  %v2580_v26 = vpop.permute.xlu0 %596  ;;  %v2582_v46 = vpop.permute.xlu2 %736 }
  0xd4   : > { %3875 = vst [vmem:[#allocation42_spill] sm:$0xff] %v2566_v40  ;;  %1076 = vperm.xlu2 %1992, %v2236_v14   ;;  %vm488_vm5 = vcmp.ge.f32.partialorder %v2373_v52, %v483_v24  ;;  %vm489_vm6 = vcmp.ge.f32.partialorder %v2394_v62, %v483_v24  ;;  %vm490_vm7 = vcmp.ge.f32.partialorder %v2420_v17, %v483_v24  ;;  %v500_v4 = vsel %vm484_vm1, %v2496_v28, 128 }
  0xd5   : > { %3876 = vst [vmem:[#allocation43_spill] sm:$0xff] %v2569_v41  ;;  %vm491_vm8 = vcmp.ge.f32.partialorder %v2451_v47, %v483_v24  ;;  %1072 = vperm.xlu1 %1991, %v2208_v7   ;;  %vm492_vm9 = vcmp.ge.f32.partialorder %v2391_v61, %v483_v24  ;;  %vm493_vm10 = vcmp.ge.f32.partialorder %v2414_v15, %v483_v24  ;;  %v501_v32 = vsel %vm485_vm2, %v2522_v11, 128 }
  0xd6   : > { %vm494_vm11 = vcmp.ge.f32.partialorder %v2441_v39, %v483_v24  ;;  %vm495_vm12 = vcmp.ge.f32.partialorder %v2478_v22, %v483_v24  ;;  %1112 = vperm.xlu0 %1993, %v2289_v27   ;;  %vm496_vm13 = vcmp.ge.f32.partialorder %v2429_v29, %v483_v24  ;;  %vm497_vm14 = vcmp.ge.f32.partialorder %v2426_v25, %v483_v24 }
  0xd7   : > { %vm498_vm15 = vcmp.ge.f32.partialorder %v2456_v53, %v483_v24  ;;  %vm499_vm0 = vcmp.ge.f32.partialorder %v2481_v23, %v483_v24  ;;  %v502_v27 = vsel %vm486_vm3, %v2525_v30, 128  ;;  %v503_v58 = vsel %vm487_vm4, %v2528_v48, 128 }
  0xd8   : > { %v504_v14 = vsel %vm488_vm5, %v2533_v20, 128  ;;  %v505_v51 = vsel %vm489_vm6, %v2536_v19, 128  ;;  %v506_v63 = vsel %vm490_vm7, %v2542_v8, 128  ;;  %v507_v16 = vsel %vm491_vm8, %v2545_v6, 128 }
  0xd9   : > { %v508_v44 = vsel %vm492_vm9, %v2548_v33, 128  ;;  %v509_v52 = vsel %vm493_vm10, %v2551_v54, 128  ;;  %v510_v62 = vsel %vm494_vm11, %v2554_v43, 128  ;;  %v511_v17 = vsel %vm495_vm12, %v2557_v31, 128 }
  0xda   : > { %v512_v47 = vsel %vm496_vm13, %v2560_v56, 128  ;;  %v513_v61 = vsel %vm497_vm14, %v2563_v10, 128  ;;  %v514_v15 = vsel %vm498_vm15, %v2566_v40, 128  ;;  %v515_v39 = vsel %vm499_vm0, %v2569_v41, 128  ;;  %v601_v43 = vpop.permute.xlu1 %600 }
  0xdb   : > { %vm516_vm1 = vcmp.lt.s32.totalorder %v500_v4, %v504_v14  ;;  %vm518_vm2 = vcmp.lt.s32.totalorder %v501_v32, %v505_v51  ;;  %vm520_vm3 = vcmp.lt.s32.totalorder %v502_v27, %v506_v63  ;;  %vm522_vm4 = vcmp.lt.s32.totalorder %v503_v58, %v507_v16  ;;  %v609_v22 = vpop.permute.xlu0 %608  ;;  %v745_v29 = vpop.permute.xlu2 %744 }
  0xdc   : > { %1088 = vperm.xlu2 %1992, %v2202_v5   ;;  %v517_v56 = vsel %vm516_vm1, %v500_v4, %v504_v14  ;;  %v519_v25 = vsel %vm518_vm2, %v501_v32, %v505_v51  ;;  %v521_v10 = vsel %vm520_vm3, %v502_v27, %v506_v63  ;;  %v523_v31 = vsel %vm522_vm4, %v503_v58, %v507_v16 }
  0xdd   : > { %1084 = vperm.xlu1 %1991, %v2233_v13   ;;  %vm524_vm5 = vcmp.lt.s32.totalorder %v517_v56, %v508_v44  ;;  %vm526_vm6 = vcmp.lt.s32.totalorder %v519_v25, %v509_v52  ;;  %vm528_vm7 = vcmp.lt.s32.totalorder %v521_v10, %v510_v62  ;;  %vm530_vm8 = vcmp.lt.s32.totalorder %v523_v31, %v511_v17 }
  0xde   : > { %1124 = vperm.xlu0 %1993, %v2317_v34   ;;  %v525_v53 = vsel %vm524_vm5, %v517_v56, %v508_v44  ;;  %v527_v23 = vsel %vm526_vm6, %v519_v25, %v509_v52  ;;  %v529_v24 = vsel %vm528_vm7, %v521_v10, %v510_v62  ;;  %v531_v41 = vsel %vm530_vm8, %v523_v31, %v511_v17 }
  0xdf   : > { %vm532_vm9 = vcmp.lt.s32.totalorder %v525_v53, %v512_v47  ;;  %vm534_vm10 = vcmp.lt.s32.totalorder %v527_v23, %v513_v61  ;;  %vm536_vm11 = vcmp.lt.s32.totalorder %v529_v24, %v514_v15  ;;  %vm538_vm12 = vcmp.lt.s32.totalorder %v531_v41, %v515_v39 }
  0xe0   : > { %v533_v14 = vsel %vm532_vm9, %v525_v53, %v512_v47  ;;  %v535_v4 = vsel %vm534_vm10, %v527_v23, %v513_v61  ;;  %v537_v27 = vsel %vm536_vm11, %v529_v24, %v514_v15  ;;  %v539_v58 = vsel %vm538_vm12, %v531_v41, %v515_v39 }
  0xe1   : > { %vm540_vm13 = vcmp.lt.s32.totalorder %v533_v14, %v535_v4  ;;  %vm542_vm14 = vcmp.lt.s32.totalorder %v537_v27, %v539_v58  ;;  %v2652_v32 = vadd.f32 %v2574_v59, %v2382_v57  ;;  %v2656_v56 = vadd.f32 %v2580_v26, %v2436_v37 }
  0xe2   : > { %v541_v10 = vsel %vm540_vm13, %v533_v14, %v535_v4  ;;  %v543_v31 = vsel %vm542_vm14, %v537_v27, %v539_v58  ;;  %v2660_v51 = vadd.f32 %v2498_v2, %v2472_v18  ;;  %v2663_v63 = vadd.f32 %v601_v43, %v2470_v45  ;;  %v613_v41 = vpop.permute.xlu1 %612 }
  0xe3   : > { %vm544_vm15 = vcmp.lt.s32.totalorder %v541_v10, %v543_v31  ;;  %v3877_v59 = vmax.f32 %v2467_v3, %v2461_v0  ;;  %v3878_v26 = vmax.f32 %v2491_v1, %v2488_v42  ;;  %v2674_v52 = vadd.f32 %v609_v22, %v2407_v9  ;;  %v757_v2 = vpop.permute.xlu2 %756 }
  0xe4   : > { %1096 = vperm.xlu2 %1992, %v2264_v21   ;;  %v545_v43 = vsel %vm544_vm15, %v541_v10, %v543_v31  ;;  %v3879_v62 = vmax.f32 %v2510_v35, %v2513_v55  ;;  %v2682_v47 = vadd.f32 %v745_v29, %v2367_v50  ;;  %v2685_v61 = vadd.f32 %v613_v41, %v2438_v38  ;;  %v729_v15 = vpop.permute.xlu0 %728  ;;  %v3883_v41 = vld [vmem:[#allocation7_spill] sm:$0xff] }
  0xe5   : > { %v639_v16 = vmax.f32 %v3877_v59, %v2652_v32  ;;  %v641_v44 = vmax.f32 %v3878_v26, %v2656_v56  ;;  %1092 = vperm.xlu1 %1991, %v2230_v12   ;;  %v644_v22 = vmax.f32 %v2539_v36, %v2674_v52  ;;  %v2694_v23 = vadd.f32 %v729_v15, %v2365_v49  ;;  %v3882_v36 = vld [vmem:[#allocation11_spill] sm:$0xff] }
  0xe6   : > { %v642_v17 = vmax.f32 %v3879_v62, %v2663_v63  ;;  %3880 = vst [vmem:[#allocation44_spill] sm:$0xff] %v2682_v47  ;;  %v3781_v24 = vmov 5   ;;  %v3884_v59 = vld [vmem:[#allocation19_spill] sm:$0xff]  ;;  %v3885_v62 = vld [vmem:[#allocation20_spill] sm:$0xff] }
  0xe7   : > { %v643_v39 = vmax.f32 %v639_v16, %v2572_v60  ;;  %v645_v53 = vmax.f32 %v641_v44, %v2685_v61  ;;  %3881 = vst [vmem:[#allocation45_spill] sm:$0xff] %v2694_v23  ;;  %1994 = vset.pattern.permute.xlu0 %v3781_v24  ;;  %v807_v4 = vmax.f32 %v2694_v23, %v2682_v47  ;;  %v546_v44 = vrot.slane %v545_v43, 4  ;;  %v3890_v23 = vld [vmem:[#allocation22_spill] sm:$0xff] }
  0xe8   : > { %v646_v25 = vmax.f32 %v642_v17, %v2660_v51  ;;  %1244 = vperm.xlu0 %1994, %v2208_v7  }
  0xe9   : > { %v647_v29 = vmax.f32 %v643_v39, %v644_v22  ;;  %vm547_vm0 = vcmp.lt.s32.totalorder %v545_v43, %v546_v44 }
  0xea   : > { %v648_v14 = vmax.f32 %v645_v53, %v646_v25  ;;  %v3886_v53 = vld [vmem:[#allocation13_spill] sm:$0xff]  ;;  %v2723_v47 = vsel %vm547_vm0, %v545_v43, %v546_v44  ;;  %v3891_v43 = vld [vmem:[#allocation28_spill] sm:$0xff] }
  0xeb   : > { %v2700_v58 = vpop.permute.xlu2 %768  ;;  %v733_v10 = vpop.permute.xlu1 %732  ;;  %v3892_v44 = vld [vmem:[#allocation29_spill] sm:$0xff] }
  0xec   : > { %v649_v27 = vmax.f32 %v647_v29, %v648_v14  ;;  %1108 = vperm.xlu2 %1992, %v3882_v36   ;;  %v2705_v16 = vadd.f32 %v733_v10, %v3884_v59  ;;  %v749_v26 = vpop.permute.xlu0 %748  ;;  %v3887_v10 = vld [vmem:[#allocation26_spill] sm:$0xff] }
  0xed   : > { %1104 = vperm.xlu1 %1991, %v3883_v41   ;;  %v2708_v17 = vadd.f32 %v749_v26, %v3885_v62  ;;  %v2717_v24 = vadd.f32 %v757_v2, %v3887_v10  ;;  %v3888_v26 = vld [vmem:[#allocation9_spill] sm:$0xff] }
  0xee   : > { %v650_v31 = vrot.slane %v649_v27, 4 }
  0xf0   : > { %v651_v15 = vmax.f32 %v649_v27, %v650_v31  ;;  %1264 = vperm.xlu0 %1994, %v2230_v12   ;;  %v3889_v27 = vld [vmem:[#allocation25_spill] sm:$0xff] }
  0xf2   : > { %v652_v39 = vrot.slane %v651_v15, 2 }
  0xf3   : > { %v2713_v25 = vpop.permute.xlu2 %780  ;;  %v741_v29 = vpop.permute.xlu1 %740 }
  0xf4   : > { %v653_v22 = vmax.f32 %v651_v15, %v652_v39  ;;  %1120 = vperm.xlu2 %1992, %v3886_v53   ;;  %v2721_v31 = vadd.f32 %v741_v29, %v3889_v27  ;;  %v761_v7 = vpop.permute.xlu0 %760  ;;  %v2732_v53 = vadd.f32 %v2582_v46, %v3890_v23  ;;  %v3893_v46 = vld [vmem:[#allocation30_spill] sm:$0xff]  ;;  %v3895_v29 = vld [vmem:[#allocation12_spill] sm:$0xff] }
  0xf5   : > { %1116 = vperm.xlu1 %1991, %v3888_v26   ;;  %v2726_v12 = vadd.f32 %v761_v7, %v2382_v57 }
  0xf6   : > { %v654_v14 = vrot.slane %v653_v22, 1 }
  0xf7   : > { %v2735_v2 = vmax.f32 %v807_v4, %v2726_v12  ;;  %v3894_v4 = vld [vmem:[#allocation14_spill] sm:$0xff] }
  0xf8   : > { %v655_v15 = vmax.f32 %v653_v22, %v654_v14  ;;  %1276 = vperm.xlu0 %1994, %v3883_v41  }
  0xfa   : > { %vm656_vm1 = vcmp.ge.f32.partialorder %v2467_v3, %v655_v15  ;;  %vm657_vm2 = vcmp.ge.f32.partialorder %v3891_v43, %v655_v15  ;;  %vm658_vm3 = vcmp.ge.f32.partialorder %v2491_v1, %v655_v15  ;;  %vm659_vm4 = vcmp.ge.f32.partialorder %v2510_v35, %v655_v15 }
  0xfb   : > { %vm660_vm5 = vcmp.ge.f32.partialorder %v2461_v0, %v655_v15  ;;  %vm661_vm6 = vcmp.ge.f32.partialorder %v3892_v44, %v655_v15  ;;  %vm662_vm7 = vcmp.ge.f32.partialorder %v2488_v42, %v655_v15  ;;  %vm663_vm8 = vcmp.ge.f32.partialorder %v2513_v55, %v655_v15  ;;  %v753_v41 = vpop.permute.xlu1 %752 }
  0xfc   : > { %vm664_vm9 = vcmp.ge.f32.partialorder %v2652_v32, %v655_v15  ;;  %vm665_vm10 = vcmp.ge.f32.partialorder %v3893_v46, %v655_v15  ;;  %vm666_vm11 = vcmp.ge.f32.partialorder %v2656_v56, %v655_v15  ;;  %vm667_vm12 = vcmp.ge.f32.partialorder %v2663_v63, %v655_v15  ;;  %1132 = vperm.xlu2 %1992, %v3894_v4   ;;  %v773_v10 = vpop.permute.xlu0 %772  ;;  %v2769_v4 = vpop.permute.xlu2 %900 }
  0xfd   : > { %vm668_vm13 = vcmp.ge.f32.partialorder %v2572_v60, %v655_v15  ;;  %vm669_vm14 = vcmp.ge.f32.partialorder %v2674_v52, %v655_v15  ;;  %vm670_vm15 = vcmp.ge.f32.partialorder %v2685_v61, %v655_v15  ;;  %vm671_vm0 = vcmp.ge.f32.partialorder %v2660_v51, %v655_v15  ;;  %1128 = vperm.xlu1 %1991, %v3895_v29  }
  0xfe   : > { %v672_v7 = vsel %vm656_vm1, %v2496_v28, 128  ;;  %v673_v22 = vsel %vm657_vm2, %v2522_v11, 128  ;;  %v674_v14 = vsel %vm658_vm3, %v2525_v30, 128  ;;  %v675_v39 = vsel %vm659_vm4, %v2528_v48, 128 }
  0xff   : > { %v676_v3 = vsel %vm660_vm5, %v2533_v20, 128  ;;  %v677_v43 = vsel %vm661_vm6, %v2536_v19, 128  ;;  %v678_v1 = vsel %vm662_vm7, %v2542_v8, 128  ;;  %v679_v35 = vsel %vm663_vm8, %v2545_v6, 128  ;;  %v3896_v20 = vld [vmem:[#allocation38_spill] sm:$0xff]  ;;  %v3897_v19 = vld [vmem:[#allocation39_spill] sm:$0xff] }
 0x100   : > { %v680_v48 = vsel %vm664_vm9, %v2548_v33, 128  ;;  %v681_v0 = vsel %vm665_vm10, %v2551_v54, 128  ;;  %v682_v44 = vsel %vm666_vm11, %v3896_v20, 128  ;;  %v683_v42 = vsel %vm667_vm12, %v3897_v19, 128  ;;  %v3898_v8 = vld [vmem:[#allocation40_spill] sm:$0xff]  ;;  %v3899_v6 = vld [vmem:[#allocation41_spill] sm:$0xff]  ;;  %1288 = vperm.xlu0 %1994, %v3888_v26  }
 0x101   : > { %v684_v55 = vsel %vm668_vm13, %v3898_v8, 128  ;;  %v685_v32 = vsel %vm669_vm14, %v3899_v6, 128  ;;  %v686_v46 = vsel %vm670_vm15, %v2566_v40, 128  ;;  %v3900_v54 = vld [vmem:[#allocation43_spill] sm:$0xff]  ;;  %vm688_vm1 = vcmp.lt.s32.totalorder %v672_v7, %v676_v3 }
 0x102   : > { %v687_v56 = vsel %vm671_vm0, %v3900_v54, 128  ;;  %vm690_vm2 = vcmp.lt.s32.totalorder %v673_v22, %v677_v43  ;;  %vm692_vm3 = vcmp.lt.s32.totalorder %v674_v14, %v678_v1  ;;  %vm694_vm4 = vcmp.lt.s32.totalorder %v675_v39, %v679_v35 }
 0x103   : > { %v3901_v60 = vrot.slane %v2723_v47, 2  ;;  %v689_v52 = vsel %vm688_vm1, %v672_v7, %v676_v3  ;;  %v691_v61 = vsel %vm690_vm2, %v673_v22, %v677_v43  ;;  %v693_v40 = vsel %vm692_vm3, %v674_v14, %v678_v1  ;;  %v765_v19 = vpop.permute.xlu1 %764 }
 0x104   : > { %v695_v6 = vsel %vm694_vm4, %v675_v39, %v679_v35  ;;  %vm696_vm6 = vcmp.lt.s32.totalorder %v689_v52, %v680_v48  ;;  %vm698_vm7 = vcmp.lt.s32.totalorder %v691_v61, %v681_v0  ;;  %vm700_vm8 = vcmp.lt.s32.totalorder %v693_v40, %v682_v44  ;;  %v785_v7 = vpop.permute.xlu0 %784  ;;  %v2817_v22 = vpop.permute.xlu2 %912  ;;  %v3907_v35 = vld [vmem:[#allocation6_spill] sm:$0xff] }
 0x105   : > { %vm2811_vm5 = vcmp.lt.s32.totalorder %v2723_v47, %v3901_v60  ;;  %vm702_vm9 = vcmp.lt.s32.totalorder %v695_v6, %v683_v42  ;;  %v697_v51 = vsel %vm696_vm6, %v689_v52, %v680_v48  ;;  %v699_v15 = vsel %vm698_vm7, %v691_v61, %v681_v0  ;;  %v3905_v48 = vld [vmem:[#allocation5_spill] sm:$0xff] }
 0x106   : > { %v701_v54 = vsel %vm700_vm8, %v693_v40, %v682_v44  ;;  %v703_v8 = vsel %vm702_vm9, %v695_v6, %v683_v42  ;;  %v3904_v26 = vmov 5   ;;  %vm704_vm10 = vcmp.lt.s32.totalorder %v697_v51, %v684_v55  ;;  %v3906_v6 = vld [vmem:[#allocation23_spill] sm:$0xff] }
 0x107   : > { %1996 = vset.pattern.permute.xlu2 %v3904_v26  ;;  %vm706_vm11 = vcmp.lt.s32.totalorder %v699_v15, %v685_v32  ;;  %vm708_vm12 = vcmp.lt.s32.totalorder %v701_v54, %v686_v46  ;;  %vm710_vm13 = vcmp.lt.s32.totalorder %v703_v8, %v687_v56  ;;  %1995 = vset.pattern.permute.xlu1 %v3904_v26  ;;  %v3912_v26 = vld [vmem:[#allocation18_spill] sm:$0xff]  ;;  %vm1759_vm4 = vcmask 1040384  }
 0x108   : > { %v705_v39 = vsel %vm704_vm10, %v697_v51, %v684_v55  ;;  %v707_v14 = vsel %vm706_vm11, %v699_v15, %v685_v32  ;;  %v709_v3 = vsel %vm708_vm12, %v701_v54, %v686_v46  ;;  %v711_v43 = vsel %vm710_vm13, %v703_v8, %v687_v56  ;;  %1252 = vperm.xlu2 %1996, %v3905_v48   ;;  %v3908_v54 = vld [vmem:[#allocation21_spill] sm:$0xff] }
 0x109   : > { %vm712_vm14 = vcmp.lt.s32.totalorder %v705_v39, %v707_v14  ;;  %vm714_vm15 = vcmp.lt.s32.totalorder %v709_v3, %v711_v43  ;;  %v2821_v40 = vadd.f32 %v753_v41, %v3906_v6  ;;  %v2824_v1 = vadd.f32 %v773_v10, %v2470_v45  ;;  %1248 = vperm.xlu1 %1995, %v3907_v35  }
 0x10a   : > { %v713_v0 = vsel %vm712_vm14, %v705_v39, %v707_v14  ;;  %v715_v44 = vsel %vm714_vm15, %v709_v3, %v711_v43  ;;  %v2829_v42 = vadd.f32 %v2700_v58, %v2436_v37  ;;  %v2832_v8 = vadd.f32 %v765_v19, %v3908_v54  ;;  %1300 = vperm.xlu0 %1994, %v3895_v29  }
 0x10b   : > { %vm716_vm0 = vcmp.lt.s32.totalorder %v713_v0, %v715_v44  ;;  %v809_v55 = vmax.f32 %v2732_v53, %v2821_v40  ;;  %v3909_v10 = vmax.f32 %v2721_v31, %v2717_v24  ;;  %v2841_v32 = vadd.f32 %v785_v7, %v2438_v38  ;;  %v777_v51 = vpop.permute.xlu1 %776 }
 0x10c   : > { %v717_v46 = vsel %vm716_vm0, %v713_v0, %v715_v44  ;;  %v2846_v58 = vadd.f32 %v2713_v25, %v2407_v9  ;;  %v3910_v19 = vmax.f32 %v2705_v16, %v2708_v17  ;;  %v3911_v15 = vrot.slane %v2723_v47, 2  ;;  %v921_v39 = vpop.permute.xlu2 %920 }
 0x10d   : > { %v814_v41 = vmax.f32 %v3909_v10, %v2824_v1  ;;  %v718_v60 = vrot.slane %v717_v46, 4  ;;  %v813_v52 = vmax.f32 %v809_v55, %v2829_v42  ;;  %v2861_v7 = vadd.f32 %v777_v51, %v3912_v26  ;;  %v905_v43 = vpop.permute.xlu0 %904 }
 0x10e   : > { %v812_v56 = vmax.f32 %v3910_v19, %v2832_v8  ;;  %v551_v29 = vsel %vm2811_vm5, %v2723_v47, %v3911_v15  ;;  %v2865_v3 = vadd.f32 %v921_v39, %v3885_v62  ;;  %v2871_v47 = vadd.f32 %v905_v43, %v3884_v59  ;;  %v3929_v62 = vld [vmem:[#allocation41_spill] sm:$0xff]  ;;  %v3931_v59 = vld [vmem:[#allocation43_spill] sm:$0xff] }
 0x10f   : > { %vm719_vm1 = vcmp.lt.s32.totalorder %v717_v46, %v718_v60  ;;  %v817_v25 = vmax.f32 %v813_v52, %v2841_v32  ;;  %v815_v0 = vmax.f32 %v2735_v2, %v2861_v7  ;;  %v552_v63 = vrot.slane %v551_v29, 1 }
 0x110   : > { %v816_v61 = vmax.f32 %v812_v56, %v2846_v58  ;;  %v720_v14 = vsel %vm719_vm1, %v717_v46, %v718_v60  ;;  %1260 = vperm.xlu2 %1996, %v2202_v5   ;;  %v980_v55 = vmax.f32 %v2871_v47, %v2865_v3  ;;  %v3803_v5 = vmov 6   ;;  %v3913_v60 = vld [vmem:[#allocation8_spill] sm:$0xff] }
 0x111   : > { %v721_v48 = vrot.slane %v720_v14, 2  ;;  %1256 = vperm.xlu1 %1995, %v2233_v13   ;;  %vm553_vm3 = vcmp.lt.s32.totalorder %v551_v29, %v552_v63 }
 0x112   : > { %v819_v44 = vmax.f32 %v815_v0, %v816_v61  ;;  %1998 = vset.pattern.permute.xlu0 %v3803_v5  ;;  %v554_v61 = vsel %vm553_vm3, %v551_v29, %v552_v63 }
 0x113   : > { %vm722_vm2 = vcmp.lt.s32.totalorder %v720_v14, %v721_v48  ;;  %1420 = vperm.xlu0 %1998, %v3907_v35   ;;  %v789_v2 = vpop.permute.xlu1 %788 }
 0x114   : > { %v723_v10 = vsel %vm722_vm2, %v720_v14, %v721_v48  ;;  %v2878_v13 = vadd.f32 %v789_v2, %v2472_v18  ;;  %v933_v19 = vpop.permute.xlu2 %932 }
 0x115   : > { %v724_v46 = vrot.slane %v723_v10, 1  ;;  %v925_v52 = vpop.permute.xlu0 %924 }
 0x116   : > { %v818_v51 = vmax.f32 %v814_v41, %v2878_v13  ;;  %v2887_v14 = vadd.f32 %v925_v52, %v3906_v6 }
 0x117   : > { %vm725_vm5 = vcmp.lt.s32.totalorder %v723_v10, %v724_v46 }
 0x118   : > { %v726_v56 = vsel %vm725_vm5, %v723_v10, %v724_v46  ;;  %1272 = vperm.xlu2 %1996, %v3913_v60   ;;  %v820_v35 = vmax.f32 %v817_v25, %v818_v51  ;;  %v3914_v10 = vld [vmem:[#allocation10_spill] sm:$0xff] }
 0x119   : > { %1268 = vperm.xlu1 %1995, %v2264_v21   ;;  %v2883_v15 = vsel %vm1759_vm4, %v554_v61, %v726_v56  ;;  %v2909_v61 = vadd.f32 %v2769_v4, %v2365_v49 }
 0x11a   : > { %v821_v39 = vmax.f32 %v819_v44, %v820_v35 }
 0x11b   : > { %1440 = vperm.xlu0 %1998, %v2264_v21  }
 0x11c   : > { %v822_v43 = vrot.slane %v821_v39, 4  ;;  %v2889_v48 = vpop.permute.xlu2 %944  ;;  %v909_v0 = vpop.permute.xlu1 %908 }
 0x11d   : > { %v2893_v29 = vadd.f32 %v909_v0, %v3890_v23  ;;  %v937_v41 = vpop.permute.xlu0 %936 }
 0x11e   : > { %v823_v63 = vmax.f32 %v821_v39, %v822_v43  ;;  %v2897_v25 = vadd.f32 %v937_v41, %v3908_v54  ;;  %v2921_v43 = vadd.f32 %v933_v19, %v2382_v57  ;;  %v3925_v54 = vld [vmem:[#allocation39_spill] sm:$0xff] }
 0x11f   : > { %v2986_v57 = vld [vmem:[%s2199_s11] sm:$0xff] }
 0x120   : > { %1284 = vperm.xlu2 %1996, %v3914_v10   ;;  %v824_v44 = vrot.slane %v823_v63, 2  ;;  %v2902_v46 = vmax.f32 %v980_v55, %v2897_v25  ;;  %v3915_v55 = vld [vmem:[#allocation13_spill] sm:$0xff]  ;;  %v3917_v10 = vld [vmem:[#allocation44_spill] sm:$0xff]  ;;  %3927 = vst [vmem:[#allocation7_spill] sm:$0xff] %v2986_v57 }
 0x121   : > { %1280 = vperm.xlu1 %1995, %v3882_v36  }
 0x122   : > { %v825_v2 = vmax.f32 %v823_v63, %v824_v44  ;;  %v3918_v63 = vld [vmem:[#allocation31_spill] sm:$0xff] }
 0x123   : > { %1452 = vperm.xlu0 %1998, %v3882_v36   ;;  %v2918_v36 = vadd.f32 %v2817_v22, %v3889_v27 }
 0x124   : > { %v826_v56 = vrot.slane %v825_v2, 1  ;;  %v2905_v60 = vpop.permute.xlu2 %956  ;;  %v917_v52 = vpop.permute.xlu1 %916 }
 0x125   : > { %v2913_v51 = vadd.f32 %v917_v52, %v2367_v50  ;;  %v949_v35 = vpop.permute.xlu0 %948 }
 0x126   : > { %v827_v39 = vmax.f32 %v825_v2, %v826_v56  ;;  %v2926_v0 = vadd.f32 %v949_v35, %v3912_v26  ;;  %v3919_v56 = vld [vmem:[#allocation32_spill] sm:$0xff]  ;;  %v3920_v35 = vld [vmem:[#allocation33_spill] sm:$0xff] }
 0x127   : > { %v3924_v26 = vld [vmem:[#allocation37_spill] sm:$0xff] }
 0x128   : > { %1296 = vperm.xlu2 %1996, %v2317_v34   ;;  %v3916_v34 = vld [vmem:[#allocation45_spill] sm:$0xff]  ;;  %vm829_vm7 = vcmp.ge.f32.partialorder %v2705_v16, %v827_v39  ;;  %vm830_vm8 = vcmp.ge.f32.partialorder %v2732_v53, %v827_v39  ;;  %vm831_vm9 = vcmp.ge.f32.partialorder %v2721_v31, %v827_v39  ;;  %vm832_vm10 = vcmp.ge.f32.partialorder %v3917_v10, %v827_v39  ;;  %v3921_v16 = vld [vmem:[#allocation34_spill] sm:$0xff]  ;;  %v3922_v53 = vld [vmem:[#allocation35_spill] sm:$0xff] }
 0x129   : > { %1292 = vperm.xlu1 %1995, %v3915_v55   ;;  %vm828_vm6 = vcmp.ge.f32.partialorder %v3916_v34, %v827_v39  ;;  %vm833_vm11 = vcmp.ge.f32.partialorder %v2708_v17, %v827_v39  ;;  %vm834_vm12 = vcmp.ge.f32.partialorder %v2821_v40, %v827_v39  ;;  %vm835_vm13 = vcmp.ge.f32.partialorder %v2717_v24, %v827_v39 }
 0x12a   : > { %vm836_vm14 = vcmp.ge.f32.partialorder %v2726_v12, %v827_v39  ;;  %vm837_vm15 = vcmp.ge.f32.partialorder %v2832_v8, %v827_v39  ;;  %vm838_vm0 = vcmp.ge.f32.partialorder %v2829_v42, %v827_v39  ;;  %vm839_vm1 = vcmp.ge.f32.partialorder %v2824_v1, %v827_v39  ;;  %v3928_v12 = vld [vmem:[#allocation40_spill] sm:$0xff] }
 0x12b   : > { %1464 = vperm.xlu0 %1998, %v3915_v55   ;;  %vm840_vm2 = vcmp.ge.f32.partialorder %v2861_v7, %v827_v39  ;;  %vm841_vm3 = vcmp.ge.f32.partialorder %v2846_v58, %v827_v39  ;;  %vm842_vm4 = vcmp.ge.f32.partialorder %v2841_v32, %v827_v39  ;;  %vm843_vm5 = vcmp.ge.f32.partialorder %v2878_v13, %v827_v39 }
 0x12c   : > { %v844_v22 = vsel %vm828_vm6, %v2496_v28, 128  ;;  %v845_v19 = vsel %vm829_vm7, %v2522_v11, 128  ;;  %v846_v41 = vsel %vm830_vm8, %v2525_v30, 128  ;;  %v847_v44 = vsel %vm831_vm9, %v3918_v63, 128  ;;  %v929_v2 = vpop.permute.xlu1 %928 }
 0x12d   : > { %v848_v52 = vsel %vm832_vm10, %v3919_v56, 128  ;;  %v849_v55 = vsel %vm833_vm11, %v3920_v35, 128  ;;  %v850_v34 = vsel %vm834_vm12, %v3921_v16, 128  ;;  %v851_v21 = vsel %vm835_vm13, %v3922_v53, 128  ;;  %v961_v4 = vpop.permute.xlu0 %960 }
 0x12e   : > { %v2970_v31 = vpop.permute.xlu2 %1076  ;;  %v852_v10 = vsel %vm836_vm14, %v2548_v33, 128  ;;  %v853_v17 = vsel %vm837_vm15, %v3924_v26, 128  ;;  %v854_v40 = vsel %vm838_vm0, %v3896_v20, 128  ;;  %v855_v24 = vsel %vm839_vm1, %v3925_v54, 128  ;;  %v3002_v20 = vld [vmem:[%s2199_s11 + $0x78] sm:$0xff] }
 0x12f   : > { %3923 = vst [vmem:[#allocation11_spill] sm:$0xff] %v2970_v31  ;;  %v856_v8 = vsel %vm840_vm2, %v3928_v12, 128  ;;  %v857_v42 = vsel %vm841_vm3, %v3929_v62, 128  ;;  %v3930_v31 = vld [vmem:[#allocation42_spill] sm:$0xff]  ;;  %vm860_vm6 = vcmp.lt.s32.totalorder %v844_v22, %v848_v52  ;;  %vm862_vm7 = vcmp.lt.s32.totalorder %v845_v19, %v849_v55 }
 0x130   : > { %1997 = vset.pattern.permute.xlu2 %v3803_v5  ;;  %v3926_v5 = vld [vmem:[#allocation14_spill] sm:$0xff]  ;;  %v858_v1 = vsel %vm842_vm4, %v3930_v31, 128  ;;  %vm864_vm8 = vcmp.lt.s32.totalorder %v846_v41, %v850_v34  ;;  %vm866_vm9 = vcmp.lt.s32.totalorder %v847_v44, %v851_v21  ;;  %v863_v54 = vsel %vm862_vm7, %v845_v19, %v849_v55  ;;  %3932 = vst [vmem:[#allocation9_spill] sm:$0xff] %v3002_v20 }
 0x131   : > { %1304 = vperm.xlu1 %1995, %v3926_v5   ;;  %1416 = vperm.xlu2 %1997, %v2986_v57   ;;  %v859_v5 = vsel %vm843_vm5, %v3931_v59, 128  ;;  %v861_v57 = vsel %vm860_vm6, %v844_v22, %v848_v52  ;;  %v865_v7 = vsel %vm864_vm8, %v846_v41, %v850_v34  ;;  %v867_v12 = vsel %vm866_vm9, %v847_v44, %v851_v21  ;;  %v3934_v55 = vld [vmem:[#allocation26_spill] sm:$0xff] }
 0x132   : > { %vm868_vm10 = vcmp.lt.s32.totalorder %v861_v57, %v852_v10  ;;  %vm870_vm11 = vcmp.lt.s32.totalorder %v863_v54, %v853_v17  ;;  %vm872_vm12 = vcmp.lt.s32.totalorder %v865_v7, %v854_v40  ;;  %vm874_vm13 = vcmp.lt.s32.totalorder %v867_v12, %v855_v24 }
 0x133   : > { %1476 = vperm.xlu0 %1998, %v3002_v20   ;;  %v869_v32 = vsel %vm868_vm10, %v861_v57, %v852_v10  ;;  %v871_v58 = vsel %vm870_vm11, %v863_v54, %v853_v17  ;;  %v873_v13 = vsel %vm872_vm12, %v865_v7, %v854_v40  ;;  %v875_v39 = vsel %vm874_vm13, %v867_v12, %v855_v24  ;;  %v2006_v7 = vld [vmem:[%s2199_s11 + $0x10] sm:$0xff] }
 0x134   : > { %vm876_vm14 = vcmp.lt.s32.totalorder %v869_v32, %v856_v8  ;;  %vm878_vm15 = vcmp.lt.s32.totalorder %v871_v58, %v857_v42  ;;  %vm880_vm0 = vcmp.lt.s32.totalorder %v873_v13, %v858_v1  ;;  %vm882_vm1 = vcmp.lt.s32.totalorder %v875_v39, %v859_v5  ;;  %v941_v22 = vpop.permute.xlu1 %940 }
 0x135   : > { %v877_v19 = vsel %vm876_vm14, %v869_v32, %v856_v8  ;;  %v879_v21 = vsel %vm878_vm15, %v871_v58, %v857_v42  ;;  %v881_v41 = vsel %vm880_vm0, %v873_v13, %v858_v1  ;;  %v883_v44 = vsel %vm882_vm1, %v875_v39, %v859_v5  ;;  %v3021_v42 = vld [vmem:[%s2199_s11 + $0x18] sm:$0xff] }
 0x136   : > { %v1089_v52 = vpop.permute.xlu2 %1088  ;;  %vm884_vm2 = vcmp.lt.s32.totalorder %v877_v19, %v879_v21  ;;  %vm886_vm3 = vcmp.lt.s32.totalorder %v881_v41, %v883_v44  ;;  %v3933_v57 = vmax.f32 %v2909_v61, %v2913_v51  ;;  %v3010_v34 = vadd.f32 %v929_v2, %v3934_v55  ;;  %v1081_v17 = vpop.permute.xlu0 %1080 }
 0x137   : > { %v3935_v10 = vmov 6   ;;  %v885_v40 = vsel %vm884_vm2, %v877_v19, %v879_v21  ;;  %v887_v24 = vsel %vm886_vm3, %v881_v41, %v883_v44  ;;  %v3015_v12 = vadd.f32 %v2889_v48, %v2470_v45 }
 0x138   : > { %v983_v54 = vmax.f32 %v3933_v57, %v2921_v43  ;;  %v3018_v8 = vadd.f32 %v961_v4, %v2472_v18  ;;  %vm888_vm4 = vcmp.lt.s32.totalorder %v885_v40, %v887_v24  ;;  %v982_v1 = vmax.f32 %v2918_v36, %v3010_v34 }
 0x139   : > { %1999 = vset.pattern.permute.xlu1 %v3935_v10  ;;  %1428 = vperm.xlu2 %1997, %v3021_v42   ;;  %v3028_v5 = vadd.f32 %v941_v22, %v2436_v37  ;;  %v889_v48 = vsel %vm888_vm4, %v885_v40, %v887_v24  ;;  %v3033_v4 = vadd.f32 %v2905_v60, %v2438_v38  ;;  %vm1761_vm7 = vcmask 1041408  }
 0x13a   : > { %v987_v2 = vmax.f32 %v983_v54, %v2926_v0  ;;  %1424 = vperm.xlu1 %1999, %v2006_v7   ;;  %v890_v32 = vrot.slane %v889_v48, 4  ;;  %v986_v58 = vmax.f32 %v982_v1, %v3015_v12  ;;  %v3936_v13 = vmax.f32 %v2893_v29, %v2887_v14 }
 0x13b   : > { %v3043_v21 = vadd.f32 %v1081_v17, %v3890_v23  ;;  %v3810_v1 = vmov 7  }
 0x13c   : > { %v985_v39 = vmax.f32 %v3936_v13, %v3028_v5  ;;  %vm891_vm5 = vcmp.lt.s32.totalorder %v889_v48, %v890_v32  ;;  %v990_v22 = vmax.f32 %v986_v58, %v3018_v8  ;;  %v953_v41 = vpop.permute.xlu1 %952  ;;  %2002 = vset.pattern.permute.xlu0 %v3810_v1  ;;  %v3055_v58 = vld [vmem:[%s2199_s11 + $0x28] sm:$0xff] }
 0x13d   : > { %v892_v60 = vsel %vm891_vm5, %v889_v48, %v890_v32  ;;  %v3046_v44 = vadd.f32 %v953_v41, %v2407_v9  ;;  %1596 = vperm.xlu0 %2002, %v2006_v7   ;;  %v3061_v32 = vld [vmem:[%s2199_s11 + $0x20] sm:$0xff]  ;;  %v3065_v41 = vadd.f32 %v1089_v52, %v2367_v50  ;;  %v2010_v52 = vld [vmem:[%s2199_s11 + $0x38] sm:$0xff] }
 0x13e   : > { %v989_v19 = vmax.f32 %v985_v39, %v3033_v4  ;;  %v1097_v57 = vpop.permute.xlu2 %1096  ;;  %v893_v54 = vrot.slane %v892_v60, 2  ;;  %v1101_v24 = vpop.permute.xlu0 %1100 }
 0x13f   : > { %v3049_v40 = vadd.f32 %v1097_v57, %v3906_v6  ;;  %v988_v17 = vmax.f32 %v2902_v46, %v3046_v44 }
 0x140   : > { %v992_v10 = vmax.f32 %v989_v19, %v990_v22  ;;  %vm894_vm6 = vcmp.lt.s32.totalorder %v892_v60, %v893_v54 }
 0x141   : > { %3937 = vst [vmem:[#allocation28_spill] sm:$0xff] %v3049_v40  ;;  %1436 = vperm.xlu2 %1997, %v3055_v58   ;;  %v1153_v48 = vmax.f32 %v3043_v21, %v3049_v40  ;;  %v895_v13 = vsel %vm894_vm6, %v892_v60, %v893_v54  ;;  %v991_v39 = vmax.f32 %v987_v2, %v988_v17  ;;  %v3073_v40 = vld [vmem:[%s2199_s11 + $0x40] sm:$0xff] }
 0x142   : > { %1432 = vperm.xlu1 %1999, %v3061_v32   ;;  %v896_v22 = vrot.slane %v895_v13, 1 }
 0x143   : > { %v993_v19 = vmax.f32 %v991_v39, %v992_v10 }
 0x144   : > { %vm897_vm8 = vcmp.lt.s32.totalorder %v895_v13, %v896_v22 }
 0x145   : > { %v898_v46 = vsel %vm897_vm8, %v895_v13, %v896_v22  ;;  %v994_v7 = vrot.slane %v993_v19, 4  ;;  %1616 = vperm.xlu0 %2002, %v2010_v52  }
 0x146   : > { %v3067_v57 = vpop.permute.xlu2 %1108  ;;  %v3070_v6 = vsel %vm1761_vm7, %v2883_v15, %v898_v46  ;;  %v3091_v46 = vld [vmem:[%s2199_s11 + $0x58] sm:$0xff] }
 0x147   : > { %v1073_v1 = vpop.permute.xlu1 %1072  ;;  %v995_v20 = vmax.f32 %v993_v19, %v994_v7  ;;  %v2012_v7 = vld [vmem:[%s2199_s11 + $0x50] sm:$0xff]  ;;  %v3938_v15 = vld [vmem:[#allocation38_spill] sm:$0xff] }
 0x148   : > { %v3077_v2 = vadd.f32 %v1073_v1, %v2365_v49  ;;  %v1113_v60 = vpop.permute.xlu0 %1112 }
 0x149   : > { %1448 = vperm.xlu2 %1997, %v3073_v40   ;;  %v3081_v54 = vadd.f32 %v1113_v60, %v2436_v37  ;;  %v996_v10 = vrot.slane %v995_v20, 2  ;;  %v3096_v60 = vadd.f32 %v1101_v24, %v3934_v55  ;;  %v3939_v37 = vld [vmem:[#allocation39_spill] sm:$0xff] }
 0x14a   : > { %1444 = vperm.xlu1 %1999, %v2010_v52  }
 0x14b   : > { %v3086_v17 = vmax.f32 %v1153_v48, %v3081_v54  ;;  %v997_v13 = vmax.f32 %v995_v20, %v996_v10 }
 0x14d   : > { %v998_v39 = vrot.slane %v997_v13, 1  ;;  %1628 = vperm.xlu0 %2002, %v2012_v7  }
 0x14e   : > { %v3088_v22 = vpop.permute.xlu2 %1120 }
 0x14f   : > { %v1085_v1 = vpop.permute.xlu1 %1084  ;;  %v999_v19 = vmax.f32 %v997_v13, %v998_v39 }
 0x150   : > { %v3099_v52 = vadd.f32 %v1085_v1, %v3889_v27  ;;  %v3109_v20 = vpop.permute.xlu0 %1124 }
 0x151   : > { %1460 = vperm.xlu2 %1997, %v3091_v46   ;;  %vm1000_vm9 = vcmp.ge.f32.partialorder %v2909_v61, %v999_v19  ;;  %vm1001_vm10 = vcmp.ge.f32.partialorder %v2871_v47, %v999_v19  ;;  %vm1002_vm11 = vcmp.ge.f32.partialorder %v2893_v29, %v999_v19  ;;  %vm1003_vm12 = vcmp.ge.f32.partialorder %v2918_v36, %v999_v19 }
 0x152   : > { %1456 = vperm.xlu1 %1999, %v2012_v7   ;;  %vm1004_vm13 = vcmp.ge.f32.partialorder %v2913_v51, %v999_v19  ;;  %vm1005_vm14 = vcmp.ge.f32.partialorder %v2865_v3, %v999_v19  ;;  %vm1006_vm15 = vcmp.ge.f32.partialorder %v2887_v14, %v999_v19  ;;  %vm1007_vm0 = vcmp.ge.f32.partialorder %v3010_v34, %v999_v19  ;;  %v2014_v34 = vld [vmem:[%s2199_s11 + $0x68] sm:$0xff] }
 0x153   : > { %vm1008_vm1 = vcmp.ge.f32.partialorder %v2921_v43, %v999_v19  ;;  %vm1009_vm2 = vcmp.ge.f32.partialorder %v2897_v25, %v999_v19  ;;  %vm1010_vm3 = vcmp.ge.f32.partialorder %v3028_v5, %v999_v19  ;;  %vm1011_vm4 = vcmp.ge.f32.partialorder %v3015_v12, %v999_v19  ;;  %v3941_v43 = vld [vmem:[#allocation40_spill] sm:$0xff] }
 0x154   : > { %vm1012_vm5 = vcmp.ge.f32.partialorder %v2926_v0, %v999_v19  ;;  %vm1013_vm6 = vcmp.ge.f32.partialorder %v3046_v44, %v999_v19  ;;  %vm1014_vm7 = vcmp.ge.f32.partialorder %v3033_v4, %v999_v19  ;;  %vm1015_vm8 = vcmp.ge.f32.partialorder %v3018_v8, %v999_v19 }
 0x155   : > { %v1016_v24 = vsel %vm1000_vm9, %v2496_v28, 128  ;;  %v1017_v48 = vsel %vm1001_vm10, %v2522_v11, 128  ;;  %v1018_v10 = vsel %vm1002_vm11, %v2525_v30, 128  ;;  %v1019_v13 = vsel %vm1003_vm12, %v3918_v63, 128  ;;  %1640 = vperm.xlu0 %2002, %v2014_v34  }
 0x156   : > { %v3131_v39 = vpop.permute.xlu2 %1132  ;;  %v1020_v61 = vsel %vm1004_vm13, %v3919_v56, 128  ;;  %v1021_v47 = vsel %vm1005_vm14, %v3920_v35, 128  ;;  %v1022_v1 = vsel %vm1006_vm15, %v3921_v16, 128  ;;  %v1023_v29 = vsel %vm1007_vm0, %v3922_v53, 128  ;;  %v3158_v16 = vld [vmem:[%s2199_s11 + $0x70] sm:$0xff] }
 0x157   : > { %v1093_v36 = vpop.permute.xlu1 %1092  ;;  %v1024_v7 = vsel %vm1008_vm1, %v2548_v33, 128  ;;  %v1025_v51 = vsel %vm1009_vm2, %v3924_v26, 128  ;;  %v1026_v3 = vsel %vm1010_vm3, %v3938_v15, 128  ;;  %v1027_v14 = vsel %vm1011_vm4, %v3939_v37, 128  ;;  %3940 = vst [vmem:[#allocation29_spill] sm:$0xff] %v3158_v16 }
 0x158   : > { %v1028_v33 = vsel %vm1012_vm5, %v3941_v43, 128  ;;  %v1029_v25 = vsel %vm1013_vm6, %v3929_v62, 128  ;;  %v1030_v5 = vsel %vm1014_vm7, %v3930_v31, 128  ;;  %v1031_v12 = vsel %vm1015_vm8, %v3931_v59, 128 }
 0x159   : > { %1472 = vperm.xlu2 %1997, %v3158_v16   ;;  %vm1032_vm9 = vcmp.lt.s32.totalorder %v1016_v24, %v1020_v61  ;;  %vm1034_vm10 = vcmp.lt.s32.totalorder %v1017_v48, %v1021_v47  ;;  %vm1036_vm11 = vcmp.lt.s32.totalorder %v1018_v10, %v1022_v1  ;;  %vm1038_vm12 = vcmp.lt.s32.totalorder %v1019_v13, %v1023_v29 }
 0x15a   : > { %1468 = vperm.xlu1 %1999, %v2014_v34   ;;  %v1033_v16 = vsel %vm1032_vm9, %v1016_v24, %v1020_v61  ;;  %v1035_v0 = vsel %vm1034_vm10, %v1017_v48, %v1021_v47  ;;  %v1037_v43 = vsel %vm1036_vm11, %v1018_v10, %v1022_v1  ;;  %v1039_v37 = vsel %vm1038_vm12, %v1019_v13, %v1023_v29  ;;  %v1245_v15 = vpop.permute.xlu0 %1244  ;;  %v3942_v10 = vld [vmem:[#allocation19_spill] sm:$0xff]  ;;  %v3945_v29 = vld [vmem:[#allocation20_spill] sm:$0xff] }
 0x15b   : > { %vm1040_vm13 = vcmp.lt.s32.totalorder %v1033_v16, %v1024_v7  ;;  %vm1042_vm14 = vcmp.lt.s32.totalorder %v1035_v0, %v1025_v51  ;;  %vm1044_vm15 = vcmp.lt.s32.totalorder %v1037_v43, %v1026_v3  ;;  %vm1046_vm0 = vcmp.lt.s32.totalorder %v1039_v37, %v1027_v14  ;;  %v3943_v13 = vld [vmem:[#allocation11_spill] sm:$0xff] }
 0x15c   : > { %v1041_v4 = vsel %vm1040_vm13, %v1033_v16, %v1024_v7  ;;  %v1043_v44 = vsel %vm1042_vm14, %v1035_v0, %v1025_v51  ;;  %v1045_v31 = vsel %vm1044_vm15, %v1037_v43, %v1026_v3  ;;  %v1047_v62 = vsel %vm1046_vm0, %v1039_v37, %v1027_v14  ;;  %v3947_v51 = vld [vmem:[#allocation21_spill] sm:$0xff]  ;;  %v3948_v14 = vld [vmem:[#allocation18_spill] sm:$0xff] }
 0x15d   : > { %vm1048_vm1 = vcmp.lt.s32.totalorder %v1041_v4, %v1028_v33  ;;  %vm1050_vm2 = vcmp.lt.s32.totalorder %v1043_v44, %v1029_v25  ;;  %vm1052_vm3 = vcmp.lt.s32.totalorder %v1045_v31, %v1030_v5  ;;  %vm1054_vm4 = vcmp.lt.s32.totalorder %v1047_v62, %v1031_v12 }
 0x15e   : > { %v1049_v8 = vsel %vm1048_vm1, %v1041_v4, %v1028_v33  ;;  %v1051_v19 = vsel %vm1050_vm2, %v1043_v44, %v1029_v25  ;;  %v1053_v34 = vsel %vm1052_vm3, %v1045_v31, %v1030_v5  ;;  %v1055_v24 = vsel %vm1054_vm4, %v1047_v62, %v1031_v12  ;;  %v3946_v62 = vld [vmem:[#allocation17_spill] sm:$0xff]  ;;  %v2015_v25 = vld [vmem:[%s2199_s11 + $0x8] sm:$0xff]  ;;  %v3949_v5 = vld [vmem:[#allocation7_spill] sm:$0xff] }
 0x15f   : > { %v1105_v48 = vpop.permute.xlu1 %1104  ;;  %v3176_v61 = vadd.f32 %v3943_v13, %v3942_v10  ;;  %vm1056_vm5 = vcmp.lt.s32.totalorder %v1049_v8, %v1051_v19  ;;  %vm1058_vm6 = vcmp.lt.s32.totalorder %v1053_v34, %v1055_v24  ;;  %v1154_v16 = vmax.f32 %v3099_v52, %v3096_v60 }
 0x160   : > { %v3944_v37 = vmov 7   ;;  %v1057_v1 = vsel %vm1056_vm5, %v1049_v8, %v1051_v19  ;;  %v1059_v33 = vsel %vm1058_vm6, %v1053_v34, %v1055_v24  ;;  %v3184_v31 = vadd.f32 %v1093_v36, %v3945_v29 }
 0x161   : > { %2001 = vset.pattern.permute.xlu2 %v3944_v37  ;;  %v3188_v7 = vadd.f32 %v1105_v48, %v3946_v62  ;;  %vm1060_vm7 = vcmp.lt.s32.totalorder %v1057_v1, %v1059_v33  ;;  %v3192_v3 = vadd.f32 %v3067_v57, %v3947_v51  ;;  %v3196_v43 = vadd.f32 %v3088_v22, %v3948_v14 }
 0x162   : > { %v3181_v47 = vpop.permute.xlu2 %1252  ;;  %2000 = vset.pattern.permute.xlu1 %v3944_v37  ;;  %1592 = vperm.xlu2 %2001, %v2015_v25   ;;  %v1061_v36 = vsel %vm1060_vm7, %v1057_v1, %v1059_v33  ;;  %v1152_v12 = vmax.f32 %v3176_v61, %v3184_v31  ;;  %v3204_v0 = vadd.f32 %v3109_v20, %v2407_v9  ;;  %v1265_v44 = vpop.permute.xlu0 %1264  ;;  %vm1763_vm10 = vcmask 1042432  }
 0x163   : > { %1588 = vperm.xlu1 %2000, %v3949_v5   ;;  %v3950_v57 = vmax.f32 %v3077_v2, %v3065_v41  ;;  %v1062_v22 = vrot.slane %v1061_v36, 4  ;;  %v3214_v13 = vadd.f32 %v1245_v15, %v2365_v49  ;;  %v3224_v5 = vadd.f32 %v3131_v39, %v2472_v18 }
 0x164   : > { %v1156_v8 = vmax.f32 %v1152_v12, %v3192_v3 }
 0x165   : > { %v1155_v4 = vmax.f32 %v3950_v57, %v3188_v7  ;;  %vm1063_vm8 = vcmp.lt.s32.totalorder %v1061_v36, %v1062_v22 }
 0x166   : > { %v1064_v34 = vsel %vm1063_vm8, %v1061_v36, %v1062_v22  ;;  %v1160_v24 = vmax.f32 %v1156_v8, %v3204_v0 }
 0x167   : > { %v1159_v19 = vmax.f32 %v1155_v4, %v3196_v43  ;;  %v1117_v48 = vpop.permute.xlu1 %1116  ;;  %v1065_v20 = vrot.slane %v1064_v34, 2 }
 0x168   : > { %v3217_v37 = vadd.f32 %v1117_v48, %v2470_v45  ;;  %v2016_v48 = vld [vmem:[%s2199_s11 + $0x30] sm:$0xff] }
 0x169   : > { %v1163_v33 = vmax.f32 %v1159_v19, %v1160_v24  ;;  %vm1066_vm9 = vcmp.lt.s32.totalorder %v1064_v34, %v1065_v20 }
 0x16a   : > { %v1261_v1 = vpop.permute.xlu2 %1260  ;;  %v1158_v36 = vmax.f32 %v1154_v16, %v3217_v37  ;;  %1604 = vperm.xlu2 %2001, %v3061_v32   ;;  %v1067_v15 = vsel %vm1066_vm9, %v1064_v34, %v1065_v20  ;;  %v1277_v57 = vpop.permute.xlu0 %1276 }
 0x16b   : > { %v3220_v25 = vadd.f32 %v1261_v1, %v2367_v50  ;;  %1600 = vperm.xlu1 %2000, %v3021_v42   ;;  %v1068_v4 = vrot.slane %v1067_v15, 1  ;;  %v3233_v8 = vadd.f32 %v1277_v57, %v3946_v62  ;;  %v3958_v62 = vld [vmem:[#allocation40_spill] sm:$0xff] }
 0x16c   : > { %v1162_v22 = vmax.f32 %v1158_v36, %v3224_v5 }
 0x16d   : > { %v1323_v12 = vmax.f32 %v3214_v13, %v3220_v25  ;;  %vm1069_vm11 = vcmp.lt.s32.totalorder %v1067_v15, %v1068_v4 }
 0x16e   : > { %v1070_v42 = vsel %vm1069_vm11, %v1067_v15, %v1068_v4  ;;  %v3249_v15 = vadd.f32 %v1265_v44, %v3945_v29 }
 0x16f   : > { %v3236_v39 = vmax.f32 %v1323_v12, %v3233_v8  ;;  %v1129_v32 = vpop.permute.xlu1 %1128  ;;  %v3242_v34 = vsel %vm1763_vm10, %v3070_v6, %v1070_v42  ;;  %v2017_v6 = vld [vmem:[%s2199_s11 + $0x48] sm:$0xff] }
 0x170   : > { %v3239_v16 = vadd.f32 %v1129_v32, %v2438_v38 }
 0x172   : > { %v1273_v19 = vpop.permute.xlu2 %1272  ;;  %v1161_v24 = vmax.f32 %v3086_v17, %v3239_v16  ;;  %1612 = vperm.xlu2 %2001, %v2016_v48   ;;  %v1289_v42 = vpop.permute.xlu0 %1288  ;;  %v2018_v48 = vld [vmem:[%s2199_s11 + $0x60] sm:$0xff]  ;;  %s188_s11 = sand.u32 1, %s2081_s13  }
 0x173   : > { %1608 = vperm.xlu1 %2000, %v3055_v58   ;;  %v3956_v58 = vld [vmem:[#allocation9_spill] sm:$0xff]  ;;  %s1880_s18 = sshll.u32 %s188_s11, 3  ;;  %s1775_s15 = scalar_lea.sflag [#allocation3], %s188_s11 }
 0x174   : > { %v1164_v20 = vmax.f32 %v1161_v24, %v1162_v22  ;;  %s190_s27 = scalar_lea.vmem [#allocation2], %s1880_s18 }
 0x175   : > { %s1788_s28 = sshll.u32 %s190_s27, 4  ;;  %s1789_s28 = int_to_ptr.vmem [resolvable:$true] %s1788_s28 }
 0x176   : > { %v1165_v1 = vmax.f32 %v1163_v33, %v1164_v20 }
 0x178   : > { %v1166_v36 = vrot.slane %v1165_v1, 4 }
 0x17a   : > { %v3251_v12 = vpop.permute.xlu2 %1284  ;;  %v1167_v4 = vmax.f32 %v1165_v1, %v1166_v36  ;;  %1624 = vperm.xlu2 %2001, %v2017_v6   ;;  %v3269_v1 = vadd.f32 %v1273_v19, %v3934_v55  ;;  %v3960_v55 = vld [vmem:[#allocation42_spill] sm:$0xff] }
 0x17b   : > { %v1249_v57 = vpop.permute.xlu1 %1248  ;;  %1620 = vperm.xlu1 %2000, %v3073_v40   ;;  %v3266_v40 = vadd.f32 %v3181_v47, %v3890_v23 }
 0x17c   : > { %v3256_v17 = vadd.f32 %v1249_v57, %v3942_v10  ;;  %v1168_v32 = vrot.slane %v1167_v4, 2  ;;  %v3275_v57 = vadd.f32 %v1289_v42, %v2470_v45  ;;  %v3953_v42 = vld [vmem:[#allocation36_spill] sm:$0xff]  ;;  %v3959_v45 = vld [vmem:[#allocation41_spill] sm:$0xff] }
 0x17e   : > { %v1169_v33 = vmax.f32 %v1167_v4, %v1168_v32 }
 0x180   : > { %v1170_v22 = vrot.slane %v1169_v33, 1 }
 0x182   : > { %v1171_v24 = vmax.f32 %v1169_v33, %v1170_v22  ;;  %1636 = vperm.xlu2 %2001, %v2018_v48   ;;  %v3261_v20 = vpop.permute.xlu2 %1296  ;;  %v3952_v33 = vld [vmem:[#allocation34_spill] sm:$0xff]  ;;  %v3955_v48 = vld [vmem:[#allocation39_spill] sm:$0xff] }
 0x183   : > { %v1257_v44 = vpop.permute.xlu1 %1256  ;;  %1632 = vperm.xlu1 %2000, %v3091_v46   ;;  %v3951_v46 = vld [vmem:[#allocation28_spill] sm:$0xff] }
 0x184   : > { %v3272_v36 = vadd.f32 %v1257_v44, %v3889_v27  ;;  %vm1172_vm12 = vcmp.ge.f32.partialorder %v3077_v2, %v1171_v24  ;;  %vm1173_vm13 = vcmp.ge.f32.partialorder %v3176_v61, %v1171_v24  ;;  %vm1174_vm14 = vcmp.ge.f32.partialorder %v3043_v21, %v1171_v24  ;;  %v3954_v44 = vld [vmem:[#allocation38_spill] sm:$0xff] }
 0x185   : > { %vm1175_vm15 = vcmp.ge.f32.partialorder %v3099_v52, %v1171_v24  ;;  %vm1176_vm0 = vcmp.ge.f32.partialorder %v3065_v41, %v1171_v24  ;;  %vm1177_vm1 = vcmp.ge.f32.partialorder %v3184_v31, %v1171_v24  ;;  %vm1178_vm2 = vcmp.ge.f32.partialorder %v3951_v46, %v1171_v24 }
 0x186   : > { %vm1179_vm3 = vcmp.ge.f32.partialorder %v3096_v60, %v1171_v24  ;;  %vm1180_vm4 = vcmp.ge.f32.partialorder %v3188_v7, %v1171_v24  ;;  %vm1181_vm5 = vcmp.ge.f32.partialorder %v3192_v3, %v1171_v24  ;;  %vm1182_vm6 = vcmp.ge.f32.partialorder %v3081_v54, %v1171_v24  ;;  %v3957_v60 = vld [vmem:[#allocation29_spill] sm:$0xff] }
 0x187   : > { %vm1183_vm7 = vcmp.ge.f32.partialorder %v3217_v37, %v1171_v24  ;;  %vm1184_vm8 = vcmp.ge.f32.partialorder %v3196_v43, %v1171_v24  ;;  %vm1185_vm9 = vcmp.ge.f32.partialorder %v3204_v0, %v1171_v24  ;;  %vm1186_vm10 = vcmp.ge.f32.partialorder %v3239_v16, %v1171_v24 }
 0x188   : > { %vm1187_vm11 = vcmp.ge.f32.partialorder %v3224_v5, %v1171_v24  ;;  %v1188_v47 = vsel %vm1172_vm12, %v2496_v28, 128  ;;  %v1189_v19 = vsel %vm1173_vm13, %v2522_v11, 128  ;;  %v1190_v4 = vsel %vm1174_vm14, %v2525_v30, 128 }
 0x189   : > { %v1191_v6 = vsel %vm1175_vm15, %v3918_v63, 128  ;;  %v1192_v32 = vsel %vm1176_vm0, %v3919_v56, 128  ;;  %v1193_v2 = vsel %vm1177_vm1, %v3920_v35, 128  ;;  %v1194_v61 = vsel %vm1178_vm2, %v3952_v33, 128 }
 0x18a   : > { %v1195_v21 = vsel %vm1179_vm3, %v3922_v53, 128  ;;  %v1196_v52 = vsel %vm1180_vm4, %v3953_v42, 128  ;;  %v1197_v41 = vsel %vm1181_vm5, %v3924_v26, 128  ;;  %v1198_v31 = vsel %vm1182_vm6, %v3954_v44, 128  ;;  %1648 = vperm.xlu2 %2001, %v3956_v58  }
 0x18b   : > { %v1269_v22 = vpop.permute.xlu1 %1268  ;;  %v1199_v46 = vsel %vm1183_vm7, %v3955_v48, 128  ;;  %1644 = vperm.xlu1 %2000, %v3957_v60   ;;  %v1200_v7 = vsel %vm1184_vm8, %v3958_v62, 128  ;;  %v1201_v3 = vsel %vm1185_vm9, %v3959_v45, 128  ;;  %v1202_v54 = vsel %vm1186_vm10, %v3960_v55, 128  ;;  %v3343_v58 = vpop.permute.xlu2 %1416 }
 0x18c   : > { %v1203_v37 = vsel %vm1187_vm11, %v3931_v59, 128  ;;  %vm1204_vm12 = vcmp.lt.s32.totalorder %v1188_v47, %v1192_v32  ;;  %vm1206_vm13 = vcmp.lt.s32.totalorder %v1189_v19, %v1193_v2  ;;  %vm1208_vm14 = vcmp.lt.s32.totalorder %v1190_v4, %v1194_v61 }
 0x18d   : > { %vm1210_vm15 = vcmp.lt.s32.totalorder %v1191_v6, %v1195_v21  ;;  %v1205_v43 = vsel %vm1204_vm12, %v1188_v47, %v1192_v32  ;;  %v1207_v60 = vsel %vm1206_vm13, %v1189_v19, %v1193_v2  ;;  %v1209_v62 = vsel %vm1208_vm14, %v1190_v4, %v1194_v61  ;;  %v1301_v47 = vpop.permute.xlu0 %1300  ;;  %v3962_v61 = vld [vmem:[#allocation24_spill] sm:$0xff] }
 0x18e   : > { %v1211_v48 = vsel %vm1210_vm15, %v1191_v6, %v1195_v21  ;;  %vm1212_vm0 = vcmp.lt.s32.totalorder %v1205_v43, %v1196_v52  ;;  %vm1214_vm1 = vcmp.lt.s32.totalorder %v1207_v60, %v1197_v41  ;;  %vm1216_vm2 = vcmp.lt.s32.totalorder %v1209_v62, %v1198_v31  ;;  %v3961_v6 = vld [vmem:[#allocation23_spill] sm:$0xff] }
 0x18f   : > { %vm1218_vm3 = vcmp.lt.s32.totalorder %v1211_v48, %v1199_v46  ;;  %v1213_v0 = vsel %vm1212_vm0, %v1205_v43, %v1196_v52  ;;  %v1215_v16 = vsel %vm1214_vm1, %v1207_v60, %v1197_v41  ;;  %v1217_v55 = vsel %vm1216_vm2, %v1209_v62, %v1198_v31 }
 0x190   : > { %v1219_v45 = vsel %vm1218_vm3, %v1211_v48, %v1199_v46  ;;  %vm1220_vm4 = vcmp.lt.s32.totalorder %v1213_v0, %v1200_v7  ;;  %vm1222_vm5 = vcmp.lt.s32.totalorder %v1215_v16, %v1201_v3  ;;  %vm1224_vm6 = vcmp.lt.s32.totalorder %v1217_v55, %v1202_v54 }
 0x191   : > { %vm1226_vm7 = vcmp.lt.s32.totalorder %v1219_v45, %v1203_v37  ;;  %v1221_v5 = vsel %vm1220_vm4, %v1213_v0, %v1200_v7  ;;  %v1223_v24 = vsel %vm1222_vm5, %v1215_v16, %v1201_v3  ;;  %v1225_v59 = vsel %vm1224_vm6, %v1217_v55, %v1202_v54 }
 0x192   : > { %v1227_v44 = vsel %vm1226_vm7, %v1219_v45, %v1203_v37  ;;  %vm1228_vm8 = vcmp.lt.s32.totalorder %v1221_v5, %v1223_v24  ;;  %v1326_v4 = vmax.f32 %v3272_v36, %v3269_v1  ;;  %v3348_v32 = vadd.f32 %v1269_v22, %v3961_v6 }
 0x193   : > { %v1281_v19 = vpop.permute.xlu1 %1280  ;;  %vm1230_vm9 = vcmp.lt.s32.totalorder %v1225_v59, %v1227_v44  ;;  %v1229_v62 = vsel %vm1228_vm8, %v1221_v5, %v1223_v24  ;;  %v3352_v21 = vadd.f32 %v3251_v12, %v3962_v61  ;;  %v3361_v41 = vadd.f32 %v1301_v47, %v2438_v38  ;;  %v1429_v46 = vpop.permute.xlu2 %1428 }
 0x194   : > { %v1231_v2 = vsel %vm1230_vm9, %v1225_v59, %v1227_v44  ;;  %v3355_v52 = vadd.f32 %v1281_v19, %v3947_v51  ;;  %v1330_v45 = vmax.f32 %v1326_v4, %v3275_v57  ;;  %v1325_v55 = vmax.f32 %v3266_v40, %v3348_v32 }
 0x195   : > { %vm1232_vm10 = vcmp.lt.s32.totalorder %v1229_v62, %v1231_v2  ;;  %v3365_v59 = vadd.f32 %v3261_v20, %v2407_v9  ;;  %v3963_v12 = vmax.f32 %v3256_v17, %v3249_v15  ;;  %v1421_v24 = vpop.permute.xlu0 %1420  ;;  %vm1765_vm13 = vcmask 1043456  }
 0x196   : > { %v1233_v22 = vsel %vm1232_vm10, %v1229_v62, %v1231_v2  ;;  %v1329_v48 = vmax.f32 %v1325_v55, %v3352_v21 }
 0x197   : > { %v1328_v44 = vmax.f32 %v3963_v12, %v3355_v52  ;;  %v1234_v31 = vrot.slane %v1233_v22, 4 }
 0x198   : > { %v1333_v3 = vmax.f32 %v1329_v48, %v3361_v41 }
 0x199   : > { %v1332_v7 = vmax.f32 %v1328_v44, %v3365_v59  ;;  %vm1235_vm11 = vcmp.lt.s32.totalorder %v1233_v22, %v1234_v31 }
 0x19a   : > { %v1236_v54 = vsel %vm1235_vm11, %v1233_v22, %v1234_v31 }
 0x19b   : > { %v1293_v37 = vpop.permute.xlu1 %1292  ;;  %v1237_v43 = vrot.slane %v1236_v54, 2  ;;  %v1437_v47 = vpop.permute.xlu2 %1436 }
 0x19c   : > { %v3375_v20 = vadd.f32 %v1293_v37, %v3948_v14 }
 0x19d   : > { %vm1238_vm12 = vcmp.lt.s32.totalorder %v1236_v54, %v1237_v43  ;;  %v1441_v44 = vpop.permute.xlu0 %1440 }
 0x19e   : > { %v1331_v60 = vmax.f32 %v3236_v39, %v3375_v20  ;;  %v1239_v0 = vsel %vm1238_vm12, %v1236_v54, %v1237_v43 }
 0x19f   : > { %v1240_v16 = vrot.slane %v1239_v0, 1 }
 0x1a0   : > { %v1335_v5 = vmax.f32 %v1331_v60, %v1332_v7 }
 0x1a1   : > { %vm1241_vm14 = vcmp.lt.s32.totalorder %v1239_v0, %v1240_v16 }
 0x1a2   : > { %v1242_v4 = vsel %vm1241_vm14, %v1239_v0, %v1240_v16  ;;  %v3389_v16 = vadd.f32 %v3343_v58, %v2365_v49 }
 0x1a3   : > { %v1305_v19 = vpop.permute.xlu1 %1304  ;;  %v3381_v2 = vsel %vm1765_vm13, %v3242_v34, %v1242_v4  ;;  %v3383_v39 = vpop.permute.xlu2 %1448  ;;  %v3392_v34 = vadd.f32 %v1429_v46, %v3889_v27  ;;  %v3403_v4 = vadd.f32 %v1441_v44, %v3961_v6 }
 0x1a4   : > { %v1322_v62 = vadd.f32 %v1305_v19, %v2472_v18  ;;  %v3400_v19 = vadd.f32 %v1437_v47, %v3945_v29 }
 0x1a5   : > { %v3385_v60 = vpop.permute.xlu0 %1452 }
 0x1a6   : > { %v1334_v55 = vmax.f32 %v1330_v45, %v1322_v62  ;;  %v3395_v45 = vadd.f32 %v1421_v24, %v3942_v10 }
 0x1a8   : > { %v1336_v22 = vmax.f32 %v1333_v3, %v1334_v55 }
 0x1aa   : > { %v1337_v12 = vmax.f32 %v1335_v5, %v1336_v22 }
 0x1ab   : > { %v3397_v5 = vpop.permute.xlu2 %1460 }
 0x1ac   : > { %v1338_v31 = vrot.slane %v1337_v12, 4  ;;  %v1425_v48 = vpop.permute.xlu1 %1424 }
 0x1ad   : > { %v3406_v55 = vadd.f32 %v1425_v48, %v3890_v23  ;;  %v1465_v44 = vpop.permute.xlu0 %1464 }
 0x1ae   : > { %v1339_v7 = vmax.f32 %v1337_v12, %v1338_v31 }
 0x1b0   : > { %v1340_v54 = vrot.slane %v1339_v7, 2 }
 0x1b2   : > { %v1341_v37 = vmax.f32 %v1339_v7, %v1340_v54 }
 0x1b4   : > { %v1342_v43 = vrot.slane %v1341_v37, 1  ;;  %v1433_v0 = vpop.permute.xlu1 %1432 }
 0x1b5   : > { %v3409_v58 = vadd.f32 %v1433_v0, %v2367_v50  ;;  %v3969_v0 = vld [vmem:[#allocation43_spill] sm:$0xff] }
 0x1b6   : > { %v1343_v3 = vmax.f32 %v1341_v37, %v1342_v43  ;;  %v3967_v37 = vld [vmem:[#allocation41_spill] sm:$0xff]  ;;  %v3968_v43 = vld [vmem:[#allocation42_spill] sm:$0xff] }
 0x1b8   : > { %vm1344_vm15 = vcmp.ge.f32.partialorder %v3214_v13, %v1343_v3  ;;  %vm1345_vm0 = vcmp.ge.f32.partialorder %v3256_v17, %v1343_v3  ;;  %vm1346_vm1 = vcmp.ge.f32.partialorder %v3266_v40, %v1343_v3  ;;  %vm1347_vm2 = vcmp.ge.f32.partialorder %v3272_v36, %v1343_v3 }
 0x1b9   : > { %vm1348_vm3 = vcmp.ge.f32.partialorder %v3220_v25, %v1343_v3  ;;  %vm1349_vm4 = vcmp.ge.f32.partialorder %v3249_v15, %v1343_v3  ;;  %vm1350_vm5 = vcmp.ge.f32.partialorder %v3348_v32, %v1343_v3  ;;  %vm1351_vm6 = vcmp.ge.f32.partialorder %v3269_v1, %v1343_v3  ;;  %v3964_v15 = vld [vmem:[#allocation38_spill] sm:$0xff]  ;;  %v3965_v32 = vld [vmem:[#allocation39_spill] sm:$0xff]  ;;  %v3966_v1 = vld [vmem:[#allocation40_spill] sm:$0xff] }
 0x1ba   : > { %vm1352_vm7 = vcmp.ge.f32.partialorder %v3233_v8, %v1343_v3  ;;  %vm1353_vm8 = vcmp.ge.f32.partialorder %v3355_v52, %v1343_v3  ;;  %vm1354_vm9 = vcmp.ge.f32.partialorder %v3352_v21, %v1343_v3  ;;  %vm1355_vm10 = vcmp.ge.f32.partialorder %v3275_v57, %v1343_v3  ;;  %v1473_v57 = vpop.permute.xlu2 %1472 }
 0x1bb   : > { %vm1356_vm11 = vcmp.ge.f32.partialorder %v3375_v20, %v1343_v3  ;;  %vm1357_vm12 = vcmp.ge.f32.partialorder %v3365_v59, %v1343_v3  ;;  %vm1358_vm13 = vcmp.ge.f32.partialorder %v3361_v41, %v1343_v3  ;;  %vm1359_vm14 = vcmp.ge.f32.partialorder %v1322_v62, %v1343_v3 }
 0x1bc   : > { %v1360_v46 = vsel %vm1344_vm15, %v2496_v28, 128  ;;  %v1361_v24 = vsel %vm1345_vm0, %v2522_v11, 128  ;;  %v1362_v47 = vsel %vm1346_vm1, %v2525_v30, 128  ;;  %v1363_v22 = vsel %vm1347_vm2, %v3918_v63, 128  ;;  %v1445_v31 = vpop.permute.xlu1 %1444 }
 0x1bd   : > { %v1364_v12 = vsel %vm1348_vm3, %v3919_v56, 128  ;;  %v1365_v13 = vsel %vm1349_vm4, %v3920_v35, 128  ;;  %v1366_v17 = vsel %vm1350_vm5, %v3952_v33, 128  ;;  %v1367_v40 = vsel %vm1351_vm6, %v3922_v53, 128 }
 0x1be   : > { %v1368_v36 = vsel %vm1352_vm7, %v3953_v42, 128  ;;  %v1369_v25 = vsel %vm1353_vm8, %v3924_v26, 128  ;;  %v1370_v48 = vsel %vm1354_vm9, %v3964_v15, 128  ;;  %v1371_v7 = vsel %vm1355_vm10, %v3965_v32, 128 }
 0x1bf   : > { %v1372_v54 = vsel %vm1356_vm11, %v3966_v1, 128  ;;  %v1373_v8 = vsel %vm1357_vm12, %v3967_v37, 128  ;;  %v1374_v52 = vsel %vm1358_vm13, %v3968_v43, 128  ;;  %v1375_v21 = vsel %vm1359_vm14, %v3969_v0, 128 }
 0x1c0   : > { %vm1376_vm15 = vcmp.lt.s32.totalorder %v1360_v46, %v1364_v12  ;;  %vm1378_vm0 = vcmp.lt.s32.totalorder %v1361_v24, %v1365_v13  ;;  %vm1380_vm1 = vcmp.lt.s32.totalorder %v1362_v47, %v1366_v17  ;;  %vm1382_vm2 = vcmp.lt.s32.totalorder %v1363_v22, %v1367_v40 }
 0x1c1   : > { %v1377_v27 = vsel %vm1376_vm15, %v1360_v46, %v1364_v12  ;;  %v1379_v6 = vsel %vm1378_vm0, %v1361_v24, %v1365_v13  ;;  %v1381_v20 = vsel %vm1380_vm1, %v1362_v47, %v1366_v17  ;;  %v1383_v23 = vsel %vm1382_vm2, %v1363_v22, %v1367_v40  ;;  %v3970_v47 = vld [vmem:[#allocation26_spill] sm:$0xff]  ;;  %v1477_v12 = vpop.permute.xlu0 %1476 }
 0x1c2   : > { %vm1384_vm3 = vcmp.lt.s32.totalorder %v1377_v27, %v1368_v36  ;;  %vm1386_vm4 = vcmp.lt.s32.totalorder %v1379_v6, %v1369_v25  ;;  %vm1388_vm5 = vcmp.lt.s32.totalorder %v1381_v20, %v1370_v48  ;;  %vm1390_vm6 = vcmp.lt.s32.totalorder %v1383_v23, %v1371_v7 }
 0x1c3   : > { %v1385_v59 = vsel %vm1384_vm3, %v1377_v27, %v1368_v36  ;;  %v1387_v10 = vsel %vm1386_vm4, %v1379_v6, %v1369_v25  ;;  %v1389_v41 = vsel %vm1388_vm5, %v1381_v20, %v1370_v48  ;;  %v1391_v29 = vsel %vm1390_vm6, %v1383_v23, %v1371_v7  ;;  %v3972_v48 = vld [vmem:[#allocation17_spill] sm:$0xff] }
 0x1c4   : > { %vm1392_vm7 = vcmp.lt.s32.totalorder %v1385_v59, %v1372_v54  ;;  %vm1394_vm8 = vcmp.lt.s32.totalorder %v1387_v10, %v1373_v8  ;;  %vm1396_vm9 = vcmp.lt.s32.totalorder %v1389_v41, %v1374_v52  ;;  %vm1398_vm10 = vcmp.lt.s32.totalorder %v1391_v29, %v1375_v21  ;;  %v1457_v46 = vpop.permute.xlu1 %1456 }
 0x1c5   : > { %v1393_v62 = vsel %vm1392_vm7, %v1385_v59, %v1372_v54  ;;  %v1395_v3 = vsel %vm1394_vm8, %v1387_v10, %v1373_v8  ;;  %v1397_v49 = vsel %vm1396_vm9, %v1389_v41, %v1374_v52  ;;  %v1399_v50 = vsel %vm1398_vm10, %v1391_v29, %v1375_v21  ;;  %v3971_v29 = vld [vmem:[#allocation27_spill] sm:$0xff]  ;;  %v3507_v54 = vpop.permute.xlu2 %1592 }
 0x1c6   : > { %vm1400_vm11 = vcmp.lt.s32.totalorder %v1393_v62, %v1395_v3  ;;  %vm1402_vm12 = vcmp.lt.s32.totalorder %v1397_v49, %v1399_v50  ;;  %v1495_v24 = vmax.f32 %v3389_v16, %v3409_v58  ;;  %v3476_v22 = vadd.f32 %v1445_v31, %v3970_v47 }
 0x1c7   : > { %v1401_v27 = vsel %vm1400_vm11, %v1393_v62, %v1395_v3  ;;  %v1403_v6 = vsel %vm1402_vm12, %v1397_v49, %v1399_v50  ;;  %v1497_v23 = vmax.f32 %v3406_v55, %v3403_v4  ;;  %v3481_v13 = vadd.f32 %v1457_v46, %v3962_v61 }
 0x1c8   : > { %vm1404_vm13 = vcmp.lt.s32.totalorder %v1401_v27, %v1403_v6  ;;  %v3485_v10 = vadd.f32 %v3385_v60, %v3947_v51  ;;  %v3489_v17 = vadd.f32 %v3397_v5, %v3971_v29  ;;  %v1498_v40 = vmax.f32 %v3392_v34, %v3476_v22 }
 0x1c9   : > { %v1496_v49 = vmax.f32 %v3395_v45, %v3400_v19  ;;  %v1405_v50 = vsel %vm1404_vm13, %v1401_v27, %v1403_v6  ;;  %v3496_v31 = vadd.f32 %v1473_v57, %v2438_v38  ;;  %v1501_v36 = vmax.f32 %v1497_v23, %v3481_v13 }
 0x1ca   : > { %v1406_v25 = vrot.slane %v1405_v50, 4  ;;  %v3501_v60 = vadd.f32 %v3383_v39, %v3972_v48  ;;  %v1502_v5 = vmax.f32 %v1498_v40, %v3489_v17  ;;  %v3505_v7 = vadd.f32 %v1477_v12, %v2472_v18 }
 0x1cb   : > { %v1505_v8 = vmax.f32 %v1501_v36, %v3496_v31  ;;  %v1491_v21 = vadd.f32 %v1465_v44, %v3948_v14  ;;  %v1500_v41 = vmax.f32 %v1496_v49, %v3485_v10  ;;  %vm1767_vm0 = vcmask 1044480  }
 0x1cc   : > { %vm1407_vm14 = vcmp.lt.s32.totalorder %v1405_v50, %v1406_v25  ;;  %v1499_v52 = vmax.f32 %v1495_v24, %v3501_v60  ;;  %v1506_v57 = vmax.f32 %v1502_v5, %v3505_v7  ;;  %v1469_v59 = vpop.permute.xlu1 %1468 }
 0x1cd   : > { %v1408_v20 = vsel %vm1407_vm14, %v1405_v50, %v1406_v25  ;;  %v1492_v3 = vadd.f32 %v1469_v59, %v2407_v9  ;;  %v3515_v24 = vpop.permute.xlu2 %1604  ;;  %v3526_v59 = vpop.permute.xlu0 %1596 }
 0x1ce   : > { %v1409_v39 = vrot.slane %v1408_v20, 2  ;;  %v1508_v62 = vmax.f32 %v1505_v8, %v1506_v57  ;;  %v1503_v46 = vmax.f32 %v1499_v52, %v1491_v21 }
 0x1cf   : > { %v1504_v27 = vmax.f32 %v1500_v41, %v1492_v3 }
 0x1d0   : > { %vm1410_vm15 = vcmp.lt.s32.totalorder %v1408_v20, %v1409_v39 }
 0x1d1   : > { %v1411_v6 = vsel %vm1410_vm15, %v1408_v20, %v1409_v39  ;;  %v1507_v23 = vmax.f32 %v1503_v46, %v1504_v27 }
 0x1d2   : > { %v1412_v12 = vrot.slane %v1411_v6, 1 }
 0x1d3   : > { %v1509_v44 = vmax.f32 %v1507_v23, %v1508_v62 }
 0x1d4   : > { %vm1413_vm1 = vcmp.lt.s32.totalorder %v1411_v6, %v1412_v12 }
 0x1d5   : > { %v1414_v40 = vsel %vm1413_vm1, %v1411_v6, %v1412_v12  ;;  %v1510_v50 = vrot.slane %v1509_v44, 4  ;;  %v3517_v36 = vpop.permute.xlu1 %1588  ;;  %v3522_v57 = vpop.permute.xlu2 %1612 }
 0x1d6   : > { %v3520_v49 = vsel %vm1767_vm0, %v3381_v2, %v1414_v40  ;;  %v1617_v12 = vpop.permute.xlu0 %1616 }
 0x1d7   : > { %v1511_v25 = vmax.f32 %v1509_v44, %v1510_v50 }
 0x1d9   : > { %v1512_v5 = vrot.slane %v1511_v25, 2 }
 0x1db   : > { %v1513_v8 = vmax.f32 %v1511_v25, %v1512_v5 }
 0x1dd   : > { %v1514_v52 = vrot.slane %v1513_v8, 1  ;;  %v3524_v20 = vpop.permute.xlu1 %1600  ;;  %v1625_v23 = vpop.permute.xlu2 %1624 }
 0x1df   : > { %v1515_v39 = vmax.f32 %v1513_v8, %v1514_v52 }
 0x1e1   : > { %vm1516_vm2 = vcmp.ge.f32.partialorder %v3389_v16, %v1515_v39  ;;  %vm1517_vm3 = vcmp.ge.f32.partialorder %v3395_v45, %v1515_v39  ;;  %vm1518_vm4 = vcmp.ge.f32.partialorder %v3406_v55, %v1515_v39  ;;  %vm1519_vm5 = vcmp.ge.f32.partialorder %v3392_v34, %v1515_v39 }
 0x1e2   : > { %vm1520_vm6 = vcmp.ge.f32.partialorder %v3409_v58, %v1515_v39  ;;  %vm1521_vm7 = vcmp.ge.f32.partialorder %v3400_v19, %v1515_v39  ;;  %vm1522_vm8 = vcmp.ge.f32.partialorder %v3403_v4, %v1515_v39  ;;  %vm1523_vm9 = vcmp.ge.f32.partialorder %v3476_v22, %v1515_v39 }
 0x1e3   : > { %vm1524_vm10 = vcmp.ge.f32.partialorder %v3501_v60, %v1515_v39  ;;  %vm1525_vm11 = vcmp.ge.f32.partialorder %v3485_v10, %v1515_v39  ;;  %vm1526_vm12 = vcmp.ge.f32.partialorder %v3481_v13, %v1515_v39  ;;  %vm1527_vm13 = vcmp.ge.f32.partialorder %v3489_v17, %v1515_v39 }
 0x1e4   : > { %vm1528_vm14 = vcmp.ge.f32.partialorder %v1491_v21, %v1515_v39  ;;  %vm1529_vm15 = vcmp.ge.f32.partialorder %v1492_v3, %v1515_v39  ;;  %vm1530_vm0 = vcmp.ge.f32.partialorder %v3496_v31, %v1515_v39  ;;  %vm1531_vm1 = vcmp.ge.f32.partialorder %v3505_v7, %v1515_v39 }
 0x1e5   : > { %v1532_v2 = vsel %vm1516_vm2, %v2496_v28, 128  ;;  %v1533_v41 = vsel %vm1517_vm3, %v2522_v11, 128  ;;  %v1534_v62 = vsel %vm1518_vm4, %v2525_v30, 128  ;;  %v1535_v46 = vsel %vm1519_vm5, %v3918_v63, 128  ;;  %v1609_v27 = vpop.permute.xlu1 %1608 }
 0x1e6   : > { %v1536_v6 = vsel %vm1520_vm6, %v3919_v56, 128  ;;  %v1537_v16 = vsel %vm1521_vm7, %v3920_v35, 128  ;;  %v1538_v45 = vsel %vm1522_vm8, %v3952_v33, 128  ;;  %v1539_v55 = vsel %vm1523_vm9, %v3922_v53, 128 }
 0x1e7   : > { %v1540_v34 = vsel %vm1524_vm10, %v3953_v42, 128  ;;  %v1541_v58 = vsel %vm1525_vm11, %v3924_v26, 128  ;;  %v1542_v19 = vsel %vm1526_vm12, %v3964_v15, 128  ;;  %v1543_v4 = vsel %vm1527_vm13, %v3965_v32, 128 }
 0x1e8   : > { %v1544_v22 = vsel %vm1528_vm14, %v3966_v1, 128  ;;  %v1545_v60 = vsel %vm1529_vm15, %v3967_v37, 128  ;;  %v1546_v10 = vsel %vm1530_vm0, %v3968_v43, 128  ;;  %v1547_v13 = vsel %vm1531_vm1, %v3969_v0, 128 }
 0x1e9   : > { %vm1548_vm2 = vcmp.lt.s32.totalorder %v1532_v2, %v1536_v6  ;;  %vm1550_vm3 = vcmp.lt.s32.totalorder %v1533_v41, %v1537_v16  ;;  %vm1552_vm4 = vcmp.lt.s32.totalorder %v1534_v62, %v1538_v45  ;;  %vm1554_vm5 = vcmp.lt.s32.totalorder %v1535_v46, %v1539_v55 }
 0x1ea   : > { %v1549_v17 = vsel %vm1548_vm2, %v1532_v2, %v1536_v6  ;;  %v1551_v44 = vsel %vm1550_vm3, %v1533_v41, %v1537_v16  ;;  %v1553_v21 = vsel %vm1552_vm4, %v1534_v62, %v1538_v45  ;;  %v1555_v40 = vsel %vm1554_vm5, %v1535_v46, %v1539_v55  ;;  %v1637_v62 = vpop.permute.xlu2 %1636  ;;  %v1629_v6 = vpop.permute.xlu0 %1628  ;;  %v3973_v45 = vld [vmem:[#allocation16_spill] sm:$0xff] }
 0x1eb   : > { %vm1556_vm6 = vcmp.lt.s32.totalorder %v1549_v17, %v1540_v34  ;;  %vm1558_vm7 = vcmp.lt.s32.totalorder %v1551_v44, %v1541_v58  ;;  %vm1560_vm8 = vcmp.lt.s32.totalorder %v1553_v21, %v1542_v19  ;;  %vm1562_vm9 = vcmp.lt.s32.totalorder %v1555_v40, %v1543_v4 }
 0x1ec   : > { %v1557_v3 = vsel %vm1556_vm6, %v1549_v17, %v1540_v34  ;;  %v1559_v31 = vsel %vm1558_vm7, %v1551_v44, %v1541_v58  ;;  %v1561_v50 = vsel %vm1560_vm8, %v1553_v21, %v1542_v19  ;;  %v1563_v25 = vsel %vm1562_vm9, %v1555_v40, %v1543_v4  ;;  %v3974_v34 = vld [vmem:[#allocation15_spill] sm:$0xff]  ;;  %v3975_v19 = vld [vmem:[#allocation20_spill] sm:$0xff] }
 0x1ed   : > { %vm1564_vm10 = vcmp.lt.s32.totalorder %v1557_v3, %v1544_v22  ;;  %vm1566_vm11 = vcmp.lt.s32.totalorder %v1559_v31, %v1545_v60  ;;  %vm1568_vm12 = vcmp.lt.s32.totalorder %v1561_v50, %v1546_v10  ;;  %vm1570_vm13 = vcmp.lt.s32.totalorder %v1563_v25, %v1547_v13  ;;  %v1621_v7 = vpop.permute.xlu1 %1620  ;;  %v3978_v17 = vld [vmem:[#allocation23_spill] sm:$0xff] }
 0x1ee   : > { %v1565_v5 = vsel %vm1564_vm10, %v1557_v3, %v1544_v22  ;;  %v1567_v8 = vsel %vm1566_vm11, %v1559_v31, %v1545_v60  ;;  %v1569_v52 = vsel %vm1568_vm12, %v1561_v50, %v1546_v10  ;;  %v1571_v39 = vsel %vm1570_vm13, %v1563_v25, %v1547_v13  ;;  %v3976_v22 = vld [vmem:[#allocation19_spill] sm:$0xff]  ;;  %v3977_v10 = vld [vmem:[#allocation22_spill] sm:$0xff] }
 0x1ef   : > { %vm1572_vm14 = vcmp.lt.s32.totalorder %v1565_v5, %v1567_v8  ;;  %vm1574_vm15 = vcmp.lt.s32.totalorder %v1569_v52, %v1571_v39  ;;  %v3590_v55 = vadd.f32 %v3515_v24, %v3973_v45  ;;  %v3594_v58 = vadd.f32 %v3517_v36, %v3974_v34 }
 0x1f0   : > { %v1573_v2 = vsel %vm1572_vm14, %v1565_v5, %v1567_v8  ;;  %v1575_v41 = vsel %vm1574_vm15, %v1569_v52, %v1571_v39  ;;  %v3597_v4 = vadd.f32 %v1609_v27, %v3975_v19  ;;  %v3601_v60 = vadd.f32 %v3507_v54, %v3976_v22  ;;  %v3979_v27 = vld [vmem:[#allocation25_spill] sm:$0xff] }
 0x1f1   : > { %vm1576_vm0 = vcmp.lt.s32.totalorder %v1573_v2, %v1575_v41  ;;  %v3605_v13 = vadd.f32 %v3526_v59, %v3977_v10  ;;  %v3609_v24 = vadd.f32 %v3522_v57, %v3978_v17  ;;  %v3612_v36 = vadd.f32 %v1617_v12, %v3970_v47 }
 0x1f2   : > { %v1577_v46 = vsel %vm1576_vm0, %v1573_v2, %v1575_v41  ;;  %v1654_v40 = vadd.f32 %v3524_v20, %v3979_v27  ;;  %v3617_v54 = vadd.f32 %v1621_v7, %v3972_v48  ;;  %v1667_v59 = vmax.f32 %v3594_v58, %v3590_v55  ;;  %v1641_v50 = vpop.permute.xlu0 %1640  ;;  %v1649_v5 = vpop.permute.xlu2 %1648 }
 0x1f3   : > { %v1578_v16 = vrot.slane %v1577_v46, 4  ;;  %v1668_v31 = vmax.f32 %v3601_v60, %v3597_v4  ;;  %v1669_v47 = vmax.f32 %v3605_v13, %v3609_v24  ;;  %v1661_v12 = vadd.f32 %v1629_v6, %v3962_v61 }
 0x1f4   : > { %v1660_v20 = vadd.f32 %v1625_v23, %v3947_v51  ;;  %v1670_v48 = vmax.f32 %v1654_v40, %v3612_v36  ;;  %v1671_v25 = vmax.f32 %v1667_v59, %v3617_v54  ;;  %v1663_v52 = vadd.f32 %v1637_v62, %v3948_v14 }
 0x1f5   : > { %vm1579_vm1 = vcmp.lt.s32.totalorder %v1577_v46, %v1578_v16  ;;  %v1633_v44 = vpop.permute.xlu1 %1632  ;;  %vm1769_vm3 = vcmask 1045504   ;;  %v1673_v2 = vmax.f32 %v1669_v47, %v1661_v12  ;;  %v1664_v61 = vadd.f32 %v1641_v50, %v2407_v9 }
 0x1f6   : > { %v1580_v21 = vsel %vm1579_vm1, %v1577_v46, %v1578_v16  ;;  %v3624_v57 = vadd.f32 %v1633_v44, %v3971_v29  ;;  %v1672_v29 = vmax.f32 %v1668_v31, %v1660_v20  ;;  %v1666_v51 = vadd.f32 %v1649_v5, %v2472_v18 }
 0x1f7   : > { %v1581_v3 = vrot.slane %v1580_v21, 2  ;;  %v1675_v23 = vmax.f32 %v1671_v25, %v1663_v52 }
 0x1f8   : > { %v1674_v39 = vmax.f32 %v1670_v48, %v3624_v57  ;;  %v1676_v45 = vmax.f32 %v1672_v29, %v1664_v61 }
 0x1f9   : > { %vm1582_vm2 = vcmp.lt.s32.totalorder %v1580_v21, %v1581_v3 }
 0x1fa   : > { %v1583_v7 = vsel %vm1582_vm2, %v1580_v21, %v1581_v3  ;;  %v1678_v14 = vmax.f32 %v1674_v39, %v1666_v51  ;;  %v1679_v34 = vmax.f32 %v1675_v23, %v1676_v45 }
 0x1fb   : > { %v1584_v8 = vrot.slane %v1583_v7, 1 }
 0x1fd   : > { %v1645_v41 = vpop.permute.xlu1 %1644  ;;  %vm1585_vm4 = vcmp.lt.s32.totalorder %v1583_v7, %v1584_v8 }
 0x1fe   : > { %v1665_v46 = vadd.f32 %v1645_v41, %v2438_v38  ;;  %v1586_v6 = vsel %vm1585_vm4, %v1583_v7, %v1584_v8 }
 0x1ff   : > { %v3638_v16 = vsel %vm1769_vm3, %v3520_v49, %v1586_v6 }
 0x200   : > { %v1677_v62 = vmax.f32 %v1673_v2, %v1665_v46 }
 0x202   : > { %v1680_v19 = vmax.f32 %v1677_v62, %v1678_v14 }
 0x204   : > { %v1681_v22 = vmax.f32 %v1679_v34, %v1680_v19 }
 0x206   : > { %v1682_v10 = vrot.slane %v1681_v22, 4 }
 0x208   : > { %v1683_v17 = vmax.f32 %v1681_v22, %v1682_v10 }
 0x20a   : > { %v1684_v9 = vrot.slane %v1683_v17, 2 }
 0x20c   : > { %v1685_v44 = vmax.f32 %v1683_v17, %v1684_v9 }
 0x20e   : > { %v1686_v21 = vrot.slane %v1685_v44, 1 }
 0x210   : > { %v1687_v27 = vmax.f32 %v1685_v44, %v1686_v21 }
 0x212   : > { %vm1688_vm5 = vcmp.ge.f32.partialorder %v3594_v58, %v1687_v27  ;;  %vm1689_vm6 = vcmp.ge.f32.partialorder %v3601_v60, %v1687_v27  ;;  %vm1690_vm7 = vcmp.ge.f32.partialorder %v3605_v13, %v1687_v27  ;;  %vm1691_vm8 = vcmp.ge.f32.partialorder %v1654_v40, %v1687_v27 }
 0x213   : > { %vm1692_vm9 = vcmp.ge.f32.partialorder %v3590_v55, %v1687_v27  ;;  %vm1693_vm10 = vcmp.ge.f32.partialorder %v3597_v4, %v1687_v27  ;;  %vm1694_vm11 = vcmp.ge.f32.partialorder %v3609_v24, %v1687_v27  ;;  %vm1695_vm12 = vcmp.ge.f32.partialorder %v3612_v36, %v1687_v27 }
 0x214   : > { %vm1696_vm13 = vcmp.ge.f32.partialorder %v3617_v54, %v1687_v27  ;;  %vm1697_vm14 = vcmp.ge.f32.partialorder %v1660_v20, %v1687_v27  ;;  %vm1698_vm15 = vcmp.ge.f32.partialorder %v1661_v12, %v1687_v27  ;;  %vm1699_vm0 = vcmp.ge.f32.partialorder %v3624_v57, %v1687_v27 }
 0x215   : > { %vm1700_vm1 = vcmp.ge.f32.partialorder %v1663_v52, %v1687_v27  ;;  %vm1701_vm2 = vcmp.ge.f32.partialorder %v1664_v61, %v1687_v27  ;;  %vm1702_vm3 = vcmp.ge.f32.partialorder %v1665_v46, %v1687_v27  ;;  %vm1703_vm4 = vcmp.ge.f32.partialorder %v1666_v51, %v1687_v27 }
 0x216   : > { %v1704_v38 = vsel %vm1688_vm5, %v2496_v28, 128  ;;  %v1705_v18 = vsel %vm1689_vm6, %v2522_v11, 128  ;;  %v1706_v49 = vsel %vm1690_vm7, %v2525_v30, 128  ;;  %v1707_v3 = vsel %vm1691_vm8, %v3918_v63, 128 }
 0x217   : > { %v1708_v59 = vsel %vm1692_vm9, %v3919_v56, 128  ;;  %v1709_v58 = vsel %vm1693_vm10, %v3920_v35, 128  ;;  %v1710_v28 = vsel %vm1694_vm11, %v3952_v33, 128  ;;  %v1711_v11 = vsel %vm1695_vm12, %v3922_v53, 128 }
 0x218   : > { %v1712_v30 = vsel %vm1696_vm13, %v3953_v42, 128  ;;  %v1713_v63 = vsel %vm1697_vm14, %v3924_v26, 128  ;;  %v1714_v56 = vsel %vm1698_vm15, %v3964_v15, 128  ;;  %v1715_v35 = vsel %vm1699_vm0, %v3965_v32, 128 }
 0x219   : > { %v1716_v33 = vsel %vm1700_vm1, %v3966_v1, 128  ;;  %v1717_v53 = vsel %vm1701_vm2, %v3967_v37, 128  ;;  %v1718_v55 = vsel %vm1702_vm3, %v3968_v43, 128  ;;  %v1719_v42 = vsel %vm1703_vm4, %v3969_v0, 128 }
 0x21a   : > { %vm1720_vm5 = vcmp.lt.s32.totalorder %v1704_v38, %v1708_v59  ;;  %vm1722_vm6 = vcmp.lt.s32.totalorder %v1705_v18, %v1709_v58  ;;  %vm1724_vm7 = vcmp.lt.s32.totalorder %v1706_v49, %v1710_v28  ;;  %vm1726_vm8 = vcmp.lt.s32.totalorder %v1707_v3, %v1711_v11 }
 0x21b   : > { %v1721_v26 = vsel %vm1720_vm5, %v1704_v38, %v1708_v59  ;;  %v1723_v15 = vsel %vm1722_vm6, %v1705_v18, %v1709_v58  ;;  %v1725_v4 = vsel %vm1724_vm7, %v1706_v49, %v1710_v28  ;;  %v1727_v32 = vsel %vm1726_vm8, %v1707_v3, %v1711_v11 }
 0x21c   : > { %vm1728_vm9 = vcmp.lt.s32.totalorder %v1721_v26, %v1712_v30  ;;  %vm1730_vm10 = vcmp.lt.s32.totalorder %v1723_v15, %v1713_v63  ;;  %vm1732_vm11 = vcmp.lt.s32.totalorder %v1725_v4, %v1714_v56  ;;  %vm1734_vm12 = vcmp.lt.s32.totalorder %v1727_v32, %v1715_v35 }
 0x21d   : > { %v1729_v1 = vsel %vm1728_vm9, %v1721_v26, %v1712_v30  ;;  %v1731_v37 = vsel %vm1730_vm10, %v1723_v15, %v1713_v63  ;;  %v1733_v60 = vsel %vm1732_vm11, %v1725_v4, %v1714_v56  ;;  %v1735_v43 = vsel %vm1734_vm12, %v1727_v32, %v1715_v35 }
 0x21e   : > { %vm1736_vm13 = vcmp.lt.s32.totalorder %v1729_v1, %v1716_v33  ;;  %vm1738_vm14 = vcmp.lt.s32.totalorder %v1731_v37, %v1717_v53  ;;  %vm1740_vm15 = vcmp.lt.s32.totalorder %v1733_v60, %v1718_v55  ;;  %vm1742_vm0 = vcmp.lt.s32.totalorder %v1735_v43, %v1719_v42 }
 0x21f   : > { %v1737_v0 = vsel %vm1736_vm13, %v1729_v1, %v1716_v33  ;;  %v1739_v13 = vsel %vm1738_vm14, %v1731_v37, %v1717_v53  ;;  %v1741_v24 = vsel %vm1740_vm15, %v1733_v60, %v1718_v55  ;;  %v1743_v36 = vsel %vm1742_vm0, %v1735_v43, %v1719_v42 }
 0x220   : > { %vm1744_vm1 = vcmp.lt.s32.totalorder %v1737_v0, %v1739_v13  ;;  %vm1746_vm2 = vcmp.lt.s32.totalorder %v1741_v24, %v1743_v36  ;;  %vm1771_vm6 = vcmask 1046528  }
 0x221   : > { %v1745_v40 = vsel %vm1744_vm1, %v1737_v0, %v1739_v13  ;;  %v1747_v54 = vsel %vm1746_vm2, %v1741_v24, %v1743_v36 }
 0x222   : > { %vm1748_vm3 = vcmp.lt.s32.totalorder %v1745_v40, %v1747_v54 }
 0x223   : > { %v1749_v31 = vsel %vm1748_vm3, %v1745_v40, %v1747_v54 }
 0x224   : > { %v1750_v57 = vrot.slane %v1749_v31, 4 }
 0x226   : > { %vm1751_vm4 = vcmp.lt.s32.totalorder %v1749_v31, %v1750_v57 }
 0x227   : > { %v1752_v47 = vsel %vm1751_vm4, %v1749_v31, %v1750_v57 }
 0x228   : > { %v1753_v12 = vrot.slane %v1752_v47, 2 }
 0x22a   : > { %vm1754_vm5 = vcmp.lt.s32.totalorder %v1752_v47, %v1753_v12 }
 0x22b   : > { %v1755_v20 = vsel %vm1754_vm5, %v1752_v47, %v1753_v12 }
 0x22c   : > { %v1756_v48 = vrot.slane %v1755_v20, 1 }
 0x22e   : > { %vm1757_vm7 = vcmp.lt.s32.totalorder %v1755_v20, %v1756_v48 }
 0x22f   : > { %v1758_v50 = vsel %vm1757_vm7, %v1755_v20, %v1756_v48 }
 0x230   : > { %v1772_v25 = vsel %vm1771_vm6, %v3638_v16, %v1758_v50 }
 0x231   : > { %1773 = vst [vmem:[%s190_s27] sm:$0xff] %v1772_v25 }
 0x232   : > { %2046 = shalt.err (!%p2043_p5)
}
 0x233   : > { %1916 = dma.vmem_to_hbm [thread:$0]  (%p2167_p4), %s1789_s28, 128, %s1791_s29, %s1775_s15  }
 0x234 PF: > { %p1922_p6 = scmp.ge.s32.totalorder %s2097_s17, 2  ;;  %s1802_s10 = sand.u32 1, %s2077_s12  }
 0x235   : > { %s1803_s11 = scalar_lea.sflag [#allocation3], %s1802_s10 }
 0x236   : > { %p1919_p7 = pnand %p1922_p6, %p2174_p8 }
 0x238   : > { %p1920_p9 = pneg %p1919_p7 }
 0x23a   : > { %2072 = dma.done.wait (%p1920_p9), %s1803_s11, 128  }
 0x23b   : > { %2074 = vsyncadd (%p1920_p9), %s1803_s11, 4294967168  ;;  %s16_s17 = sadd.s32 1, %s2097_s17   ;;  %s3980_s12 = smov %s2081_s13 }
 0x23c   : > { %p13_p10 = scmp.ge.s32.totalorder %s16_s17, 6   ;;  %s3981_s13 = smov %s2085_s14 }
 0x23d   : > { %s3982_s14 = smov %s2180_s25  ;;  %s3983_s15 = smov %s2093_s16 }
 0x23e   : > { %s3984_s16 = smov %s3986_s20  ;;  %15 = sbr.rel (!%p13_p10) target bundleno = 4 (0x4), region = 70 }
 0x243   :  { %1809 = vsyncpa [#allocation3], 1 }
 0x244   :  { %1811 = vsyncpa [#allocation3 + $0x1], 1 }

</bundles_post_ra>
